<compile_context>
chip_gen: v6e
topology: v6e:2x2x1
jax: 0.10.0
libtpu: 0.0.40
codegen_flags: <defaults>
</compile_context>

<pallas_src>
import functools

import jax
import jax.numpy as jnp
from jax.experimental import pallas as pl
from jax.experimental.pallas import tpu as pltpu

LANE = 128


def _round_up(v, m):
    return (v + m - 1) // m * m


# ---------------------------------------------------------------------------
# Pallas kernel: the whole SageConv2 forward (all layers + activations) fused
# ---------------------------------------------------------------------------
def _fused_sage_kernel(a_ref, x_ref, *refs, num_layers):
    o_ref = refs[-1]
    a = a_ref[...]                          # (Np, Np) bf16, reused by every layer
    x = x_ref[...].astype(jnp.float32)      # (Np, Fp) f32 working activation (stays in VMEM/vregs)
    for layer in range(num_layers):
        w = refs[2 * layer][...]            # (2*Fp, Fp) bf16, rows = [W_l ; W_r]
        b = refs[2 * layer + 1][...]        # (1, Fp) f32
        x_bf = x.astype(jnp.bfloat16)
        # mean aggregation of neighbor features on the MXU, f32 accumulate
        agg = jnp.dot(a, x_bf, preferred_element_type=jnp.float32)
        # single fused projection: [agg | x] @ [W_l ; W_r] + b
        cat = jnp.concatenate([agg.astype(jnp.bfloat16), x_bf], axis=-1)   # (Np, 2*Fp)
        h = jnp.dot(cat, w, preferred_element_type=jnp.float32) + b
        x = jnp.tanh(h) if layer < num_layers - 1 else jax.nn.sigmoid(h)
    o_ref[...] = x.astype(o_ref.dtype)


def sage_conv2_fused_call(a_pad, x_pad, packed_params):
    n_pad = a_pad.shape[0]
    f_pad = x_pad.shape[1]
    num_layers = len(packed_params)
    flat = []
    for (w, b) in packed_params:
        flat += [w, b]
    kernel = functools.partial(_fused_sage_kernel, num_layers=num_layers)
    vmem = pl.BlockSpec(memory_space=pltpu.MemorySpace.VMEM)
    return pl.pallas_call(
        kernel,
        out_shape=jax.ShapeDtypeStruct((n_pad, f_pad), jnp.float32),
        in_specs=[vmem] * (2 + len(flat)),
        out_specs=vmem,
    )(a_pad, x_pad, *flat)


# ---------------------------------------------------------------------------
# Model: SageConv2 (parameterization mirrors the PyTorch module)
# ---------------------------------------------------------------------------
def layer_dims(hidden_size, num_ly, num_feat, num_class, num_to_reduce):
    if hidden_size - (num_ly - 1) * num_to_reduce == 0:
        num_ly = int(hidden_size / num_to_reduce)
    dims = [(num_feat, hidden_size)]
    for i in range(1, num_ly):
        dims.append((hidden_size - (i - 1) * num_to_reduce,
                     hidden_size - i * num_to_reduce))
    dims.append((hidden_size - (num_ly - 1) * num_to_reduce, num_class))
    return dims


def init_params(key, dims):
    params = []
    for (f_in, f_out) in dims:
        key, k1, k2, k3 = jax.random.split(key, 4)
        scale = 1.0 / jnp.sqrt(jnp.float32(f_in))
        w_l = jax.random.uniform(k1, (f_in, f_out), jnp.float32, -scale, scale)
        w_r = jax.random.uniform(k2, (f_in, f_out), jnp.float32, -scale, scale)
        b = jax.random.uniform(k3, (f_out,), jnp.float32, -scale, scale)
        params.append((w_l, w_r, b))
    return params


def build_mean_adjacency(edge_index, num_nodes):
    # edge_index: (2, E) int32, row 0 = source, row 1 = target (PyG convention)
    src, tgt = edge_index[0], edge_index[1]
    adj = jnp.zeros((num_nodes, num_nodes), jnp.float32).at[tgt, src].add(1.0)
    deg = adj.sum(axis=1, keepdims=True)
    return adj / jnp.maximum(deg, 1.0)  # nodes with no in-edges aggregate to 0


def _pack_params(params, f_pad):
    """Stack [W_l ; W_r] into one padded bf16 weight per layer, pad bias lane-dense."""
    packed = []
    for (w_l, w_r, b) in params:
        f_in, f_out = w_l.shape
        w = jnp.zeros((2 * f_pad, f_pad), jnp.float32)
        w = w.at[:f_in, :f_out].set(w_l)
        w = w.at[f_pad:f_pad + f_in, :f_out].set(w_r)
        b_p = jnp.zeros((1, f_pad), jnp.float32).at[0, :f_out].set(b)
        packed.append((w.astype(jnp.bfloat16), b_p))
    return packed


@jax.jit
def sage_conv2_forward(x, edge_index, params):
    n, f0 = x.shape
    all_dims = [f0] + [w.shape[0] for (w, _, _) in params] + [w.shape[1] for (w, _, _) in params]
    f_pad = _round_up(max(all_dims), LANE)
    n_pad = _round_up(n, LANE)

    a = build_mean_adjacency(edge_index, n)
    a_pad = jnp.zeros((n_pad, n_pad), jnp.float32).at[:n, :n].set(a).astype(jnp.bfloat16)
    x_pad = jnp.zeros((n_pad, f_pad), jnp.float32).at[:n, :f0].set(x).astype(jnp.bfloat16)
    packed = _pack_params(params, f_pad)

    out_pad = sage_conv2_fused_call(a_pad, x_pad, packed)
    num_class = params[-1][0].shape[1]
    return out_pad[:n, :num_class]


# ---------------------------------------------------------------------------
if __name__ == "__main__":
    hidden_size, num_ly, num_feat, num_class, num_to_reduce = 32, 3, 8, 4, 8
    N = 16  # number of nodes

    key = jax.random.PRNGKey(0)
    k_x, k_e, k_p = jax.random.split(key, 3)

    # node features
    x = jax.random.normal(k_x, (N, num_feat), jnp.float32)

    # deterministic graph: bidirectional ring + a few random extra edges
    idx = jnp.arange(N, dtype=jnp.int32)
    ring_src = jnp.concatenate([idx, (idx + 1) % N])
    ring_tgt = jnp.concatenate([(idx + 1) % N, idx])
    extra_src = jax.random.randint(k_e, (8,), 0, N, jnp.int32)
    extra_tgt = (extra_src + 5) % N
    edge_index = jnp.stack(
        [jnp.concatenate([ring_src, extra_src]),
         jnp.concatenate([ring_tgt, extra_tgt])]
    )

    dims = layer_dims(hidden_size, num_ly, num_feat, num_class, num_to_reduce)
    params = init_params(k_p, dims)

    out = sage_conv2_forward(x, edge_index, params)
    out = jax.block_until_ready(out)
    assert out.shape == (N, num_class)
    assert bool(jnp.all((out >= 0.0) & (out <= 1.0)))  # sigmoid output range
    print("KERNEL_OK")
</pallas_src>

<mosaic_0001>
module attributes {stable_mosaic.version = 11 : i64} {
  func.func private @main(%arg0: i32) attributes {dimension_semantics = [#tpu.dimension_semantics<core_parallel>], iteration_bounds = array<i64: 2>, tpu.core_type = #tpu.core_type<sc_scalar_subcore>, window_params = []} {
    return
  }
}

module attributes {stable_mosaic.version = 11 : i64} {
  func.func private @main(%arg0: i32) attributes {dimension_semantics = [#tpu.dimension_semantics<core_parallel>], iteration_bounds = array<i64: 2>, tpu.core_type = #tpu.core_type<sc_scalar_subcore>, window_params = []} {
    return
  }
}

module attributes {stable_mosaic.version = 11 : i64} {
  func.func @_fused_sage_kernel(%arg0: memref<128x128xbf16, #tpu.memory_space<vmem>>, %arg1: memref<128x128xbf16, #tpu.memory_space<vmem>>, %arg2: memref<256x128xbf16, #tpu.memory_space<vmem>>, %arg3: memref<1x128xf32, #tpu.memory_space<vmem>>, %arg4: memref<256x128xbf16, #tpu.memory_space<vmem>>, %arg5: memref<1x128xf32, #tpu.memory_space<vmem>>, %arg6: memref<256x128xbf16, #tpu.memory_space<vmem>>, %arg7: memref<1x128xf32, #tpu.memory_space<vmem>>, %arg8: memref<256x128xbf16, #tpu.memory_space<vmem>>, %arg9: memref<1x128xf32, #tpu.memory_space<vmem>>, %arg10: memref<128x128xf32, #tpu.memory_space<vmem>>) attributes {dimension_semantics = [], scalar_prefetch = 0 : i64, scratch_operands = 0 : i64, tpu.core_type = #tpu.core_type<tc>} {
    %c0 = arith.constant 0 : index
    %c0_0 = arith.constant 0 : index
    %0 = vector.load %arg0[%c0, %c0_0] : memref<128x128xbf16, #tpu.memory_space<vmem>>, vector<128x128xbf16>
    %c0_1 = arith.constant 0 : index
    %c0_2 = arith.constant 0 : index
    %1 = vector.load %arg1[%c0_1, %c0_2] : memref<128x128xbf16, #tpu.memory_space<vmem>>, vector<128x128xbf16>
    %2 = arith.extf %1 : vector<128x128xbf16> to vector<128x128xf32>
    %c0_3 = arith.constant 0 : index
    %c0_4 = arith.constant 0 : index
    %3 = vector.load %arg2[%c0_3, %c0_4] : memref<256x128xbf16, #tpu.memory_space<vmem>>, vector<256x128xbf16>
    %c0_5 = arith.constant 0 : index
    %c0_6 = arith.constant 0 : index
    %4 = vector.load %arg3[%c0_5, %c0_6] : memref<1x128xf32, #tpu.memory_space<vmem>>, vector<1x128xf32>
    %5 = arith.truncf %2 : vector<128x128xf32> to vector<128x128xbf16>
    %cst = arith.constant dense<0.000000e+00> : vector<128x128xf32>
    %6 = tpu.matmul %0, %5, %cst {dimension_numbers = #tpu.dot_dimension_numbers<[1], [0], [0], [1], [0, 0, 1, 1], [], []>} : vector<128x128xbf16>, vector<128x128xbf16>, vector<128x128xf32> -> vector<128x128xf32>
    %7 = arith.truncf %6 : vector<128x128xf32> to vector<128x128xbf16>
    %8 = tpu.concatenate %7, %5 in 1 : vector<128x128xbf16>, vector<128x128xbf16> -> vector<128x256xbf16>
    %cst_7 = arith.constant dense<0.000000e+00> : vector<128x128xf32>
    %9 = tpu.matmul %8, %3, %cst_7 {dimension_numbers = #tpu.dot_dimension_numbers<[1], [0], [0], [1], [0, 0, 1, 1], [], []>} : vector<128x256xbf16>, vector<256x128xbf16>, vector<128x128xf32> -> vector<128x128xf32>
    %10 = vector.broadcast %4 : vector<1x128xf32> to vector<128x128xf32>
    %11 = arith.addf %9, %10 : vector<128x128xf32>
    %12 = math.tanh %11 : vector<128x128xf32>
    %c0_8 = arith.constant 0 : index
    %c0_9 = arith.constant 0 : index
    %13 = vector.load %arg4[%c0_8, %c0_9] : memref<256x128xbf16, #tpu.memory_space<vmem>>, vector<256x128xbf16>
    %c0_10 = arith.constant 0 : index
    %c0_11 = arith.constant 0 : index
    %14 = vector.load %arg5[%c0_10, %c0_11] : memref<1x128xf32, #tpu.memory_space<vmem>>, vector<1x128xf32>
    %15 = arith.truncf %12 : vector<128x128xf32> to vector<128x128xbf16>
    %cst_12 = arith.constant dense<0.000000e+00> : vector<128x128xf32>
    %16 = tpu.matmul %0, %15, %cst_12 {dimension_numbers = #tpu.dot_dimension_numbers<[1], [0], [0], [1], [0, 0, 1, 1], [], []>} : vector<128x128xbf16>, vector<128x128xbf16>, vector<128x128xf32> -> vector<128x128xf32>
    %17 = arith.truncf %16 : vector<128x128xf32> to vector<128x128xbf16>
    %18 = tpu.concatenate %17, %15 in 1 : vector<128x128xbf16>, vector<128x128xbf16> -> vector<128x256xbf16>
    %cst_13 = arith.constant dense<0.000000e+00> : vector<128x128xf32>
    %19 = tpu.matmul %18, %13, %cst_13 {dimension_numbers = #tpu.dot_dimension_numbers<[1], [0], [0], [1], [0, 0, 1, 1], [], []>} : vector<128x256xbf16>, vector<256x128xbf16>, vector<128x128xf32> -> vector<128x128xf32>
    %20 = vector.broadcast %14 : vector<1x128xf32> to vector<128x128xf32>
    %21 = arith.addf %19, %20 : vector<128x128xf32>
    %22 = math.tanh %21 : vector<128x128xf32>
    %c0_14 = arith.constant 0 : index
    %c0_15 = arith.constant 0 : index
    %23 = vector.load %arg6[%c0_14, %c0_15] : memref<256x128xbf16, #tpu.memory_space<vmem>>, vector<256x128xbf16>
    %c0_16 = arith.constant 0 : index
    %c0_17 = arith.constant 0 : index
    %24 = vector.load %arg7[%c0_16, %c0_17] : memref<1x128xf32, #tpu.memory_space<vmem>>, vector<1x128xf32>
    %25 = arith.truncf %22 : vector<128x128xf32> to vector<128x128xbf16>
    %cst_18 = arith.constant dense<0.000000e+00> : vector<128x128xf32>
    %26 = tpu.matmul %0, %25, %cst_18 {dimension_numbers = #tpu.dot_dimension_numbers<[1], [0], [0], [1], [0, 0, 1, 1], [], []>} : vector<128x128xbf16>, vector<128x128xbf16>, vector<128x128xf32> -> vector<128x128xf32>
    %27 = arith.truncf %26 : vector<128x128xf32> to vector<128x128xbf16>
    %28 = tpu.concatenate %27, %25 in 1 : vector<128x128xbf16>, vector<128x128xbf16> -> vector<128x256xbf16>
    %cst_19 = arith.constant dense<0.000000e+00> : vector<128x128xf32>
    %29 = tpu.matmul %28, %23, %cst_19 {dimension_numbers = #tpu.dot_dimension_numbers<[1], [0], [0], [1], [0, 0, 1, 1], [], []>} : vector<128x256xbf16>, vector<256x128xbf16>, vector<128x128xf32> -> vector<128x128xf32>
    %30 = vector.broadcast %24 : vector<1x128xf32> to vector<128x128xf32>
    %31 = arith.addf %29, %30 : vector<128x128xf32>
    %32 = math.tanh %31 : vector<128x128xf32>
    %c0_20 = arith.constant 0 : index
    %c0_21 = arith.constant 0 : index
    %33 = vector.load %arg8[%c0_20, %c0_21] : memref<256x128xbf16, #tpu.memory_space<vmem>>, vector<256x128xbf16>
    %c0_22 = arith.constant 0 : index
    %c0_23 = arith.constant 0 : index
    %34 = vector.load %arg9[%c0_22, %c0_23] : memref<1x128xf32, #tpu.memory_space<vmem>>, vector<1x128xf32>
    %35 = arith.truncf %32 : vector<128x128xf32> to vector<128x128xbf16>
    %cst_24 = arith.constant dense<0.000000e+00> : vector<128x128xf32>
    %36 = tpu.matmul %0, %35, %cst_24 {dimension_numbers = #tpu.dot_dimension_numbers<[1], [0], [0], [1], [0, 0, 1, 1], [], []>} : vector<128x128xbf16>, vector<128x128xbf16>, vector<128x128xf32> -> vector<128x128xf32>
    %37 = arith.truncf %36 : vector<128x128xf32> to vector<128x128xbf16>
    %38 = tpu.concatenate %37, %35 in 1 : vector<128x128xbf16>, vector<128x128xbf16> -> vector<128x256xbf16>
    %cst_25 = arith.constant dense<0.000000e+00> : vector<128x128xf32>
    %39 = tpu.matmul %38, %33, %cst_25 {dimension_numbers = #tpu.dot_dimension_numbers<[1], [0], [0], [1], [0, 0, 1, 1], [], []>} : vector<128x256xbf16>, vector<256x128xbf16>, vector<128x128xf32> -> vector<128x128xf32>
    %40 = vector.broadcast %34 : vector<1x128xf32> to vector<128x128xf32>
    %41 = arith.addf %39, %40 : vector<128x128xf32>
    %42 = arith.negf %41 : vector<128x128xf32>
    %43 = math.exp %42 : vector<128x128xf32>
    %cst_26 = arith.constant 1.000000e+00 : f32
    %44 = vector.broadcast %cst_26 : f32 to vector<128x128xf32>
    %45 = arith.addf %44, %43 : vector<128x128xf32>
    %46 = arith.divf %44, %45 : vector<128x128xf32>
    %c0_27 = arith.constant 0 : index
    %c0_28 = arith.constant 0 : index
    %47 = vector.load %arg10[%c0_27, %c0_28] : memref<128x128xf32, #tpu.memory_space<vmem>>, vector<128x128xf32>
    tpu.vector_store %arg10[%c0_27, %c0_28], %46 {strides = array<i32>} : memref<128x128xf32, #tpu.memory_space<vmem>>, vector<128x128xf32>,
    return
  }
}

</mosaic_0001>

<bundles_post_ra>
// kernel: sage_conv2_forward.1
= control target key start
LH: loop header
LB: loop body
LE: loop exit
PB: predicated region body
PF: predicated region fallthrough
CT: control target
= control target key end

     0   :  { %s3124_s1 = inlined_call_operand.vmem [shape: bf16[128,128], index: 1, kind: input, shape index: {}]   ;;  %s3125_s0 = inlined_call_operand.vmem [shape: bf16[128,128], index: 0, kind: input, shape index: {}]   ;;  %s3126_s2 = inlined_call_operand.vmem [shape: bf16[256,128], index: 2, kind: input, shape index: {}]   ;;  %s3127_s3 = inlined_call_operand.vmem [shape: f32[1,128], index: 3, kind: input, shape index: {}]   ;;  %s3128_s4 = inlined_call_operand.vmem [shape: bf16[256,128], index: 4, kind: input, shape index: {}]   ;;  %s3129_s5 = inlined_call_operand.vmem [shape: f32[1,128], index: 5, kind: input, shape index: {}]   ;;  %s3130_s6 = inlined_call_operand.vmem [shape: bf16[256,128], index: 6, kind: input, shape index: {}]   ;;  %s3131_s7 = inlined_call_operand.vmem [shape: f32[1,128], index: 7, kind: input, shape index: {}]   ;;  %s3132_s8 = inlined_call_operand.vmem [shape: bf16[256,128], index: 8, kind: input, shape index: {}]   ;;  %s3133_s9 = inlined_call_operand.vmem [shape: f32[1,128], index: 9, kind: input, shape index: {}]   ;;  %s3134_s10 = inlined_call_operand.vmem [shape: f32[128,128], index: 10, kind: output, shape index: {}]  }
   0x1   :  { %v2553_v0 = vld [vmem:[%s3124_s1 + $0x38] sm:$0xff]   ;;  %v2558_v1 = vld [vmem:[%s3124_s1 + $0x30] sm:$0xff]   ;;  %v2566_v2 = vld [vmem:[%s3124_s1 + $0x28] sm:$0xff]  }
   0x2   :  { %2120 = vmatprep.subr.bf16.mxu1 %v2553_v0  ;;  %v2572_v3 = vld [vmem:[%s3124_s1 + $0x20] sm:$0xff]   ;;  %v2587_v5 = vld [vmem:[%s3124_s1 + $0x18] sm:$0xff]   ;;  %v2594_v6 = vld [vmem:[%s3124_s1 + $0x10] sm:$0xff]  }
   0x3   :  { %2121 = vmatpush3.bf16.msra.mxu1 %v2553_v0  ;;  %v2578_v4 = vld [vmem:[%s3125_s0] sm:$0xff]   ;;  %v2254_v7 = vld [vmem:[%s3124_s1 + $0x8] sm:$0xff]   ;;  %v2264_v9 = vld [vmem:[%s3126_s2 + $0x78] sm:$0xff]  }
   0x4   :  { %2122 = vmatprep.subr.bf16.mxu1 %v2558_v1  ;;  %2136 = vmatprep.mubr.bf16.mxu1 %v2578_v4  ;;  %v2255_v8 = vld [vmem:[%s3124_s1] sm:$0xff]   ;;  %v2611_v10 = vld [vmem:[%s3125_s0 + $0x8] sm:$0xff]   ;;  %v2616_v11 = vld [vmem:[%s3125_s0 + $0x10] sm:$0xff]  }
   0x5   :  { %2168 = vmatprep.mubr.bf16.mxu0 %v2578_v4  ;;  %v2265_v12 = vld [vmem:[%s3126_s2 + $0x38] sm:$0xff]   ;;  %v2266_v13 = vld [vmem:[%s3126_s2 + $0x70] sm:$0xff]   ;;  %v2268_v15 = vld [vmem:[%s3126_s2 + $0x68] sm:$0xff]  }
   0x6   :  { %v2267_v14 = vld [vmem:[%s3126_s2 + $0x30] sm:$0xff]   ;;  %v2635_v16 = vld [vmem:[%s3125_s0 + $0x18] sm:$0xff]   ;;  %v2640_v17 = vld [vmem:[%s3125_s0 + $0x20] sm:$0xff]  }
   0x7   :  { %2123 = vmatpush3.bf16.msra.mxu1 %v2558_v1  ;;  %v2269_v18 = vld [vmem:[%s3126_s2 + $0x28] sm:$0xff]   ;;  %v2270_v19 = vld [vmem:[%s3126_s2 + $0x60] sm:$0xff]   ;;  %v2272_v21 = vld [vmem:[%s3126_s2 + $0x58] sm:$0xff]  }
   0x8   :  { %2124 = vmatprep.subr.bf16.mxu1 %v2566_v2  ;;  %v2271_v20 = vld [vmem:[%s3126_s2 + $0x20] sm:$0xff]   ;;  %v2659_v22 = vld [vmem:[%s3125_s0 + $0x28] sm:$0xff]   ;;  %v2664_v23 = vld [vmem:[%s3125_s0 + $0x30] sm:$0xff]  }
   0x9   :  { %v2273_v24 = vld [vmem:[%s3126_s2 + $0x18] sm:$0xff]   ;;  %v2274_v25 = vld [vmem:[%s3126_s2 + $0x50] sm:$0xff]   ;;  %v2276_v28 = vld [vmem:[%s3126_s2 + $0x48] sm:$0xff]  }
   0xa   :  { %v2275_v26 = vld [vmem:[%s3126_s2 + $0x10] sm:$0xff]   ;;  %v2680_v27 = vld [vmem:[%s3125_s0 + $0x38] sm:$0xff]   ;;  %v2277_v29 = vld [vmem:[%s3126_s2 + $0x8] sm:$0xff]  }
   0xb   :  { %2125 = vmatpush3.bf16.msra.mxu1 %v2566_v2  ;;  %v2278_v30 = vld [vmem:[%s3126_s2 + $0x40] sm:$0xff]  }
   0xc   :  { %2126 = vmatprep.subr.bf16.mxu1 %v2572_v3  ;;  %v2279_v31 = vld [vmem:[%s3126_s2] sm:$0xff]  }
   0xd   :  { %v2705_v58 = vld [vmem:[%s3127_s3] ss:$0 sm:$0xff] }
   0xf   :  { %2127 = vmatpush3.bf16.msra.mxu1 %v2572_v3 }
  0x10   :  { %2128 = vmatprep.subr.bf16.mxu1 %v2587_v5 }
  0x13   :  { %2129 = vmatpush3.bf16.msra.mxu1 %v2587_v5 }
  0x14   :  { %2130 = vmatprep.subr.bf16.mxu1 %v2594_v6 }
  0x17   :  { %2131 = vmatpush3.bf16.msra.mxu1 %v2594_v6 }
  0x18   :  { %2132 = vmatprep.subr.bf16.mxu1 %v2254_v7 }
  0x1b   :  { %2133 = vmatpush3.bf16.msra.mxu1 %v2254_v7 }
  0x1c   :  { %2134 = vmatprep.subr.bf16.mxu1 %v2255_v8 }
  0x1f   :  { %2135 = vmatpush3.bf16.msra.mxu1 %v2255_v8 }
  0x20   :  { %1816 = vmatprep.subr.bf16.mxu1 %v2264_v9 }
  0x22   :  { %2137 = vmatmul.mubr.bf16.vlgmr.msra.gmra.mxu1 %v2611_v10 }
  0x23   :  { %2140 = vmatprep.mubr.bf16.mxu1 %v2616_v11  ;;  %1817 = vmatpush3.bf16.msra.mxu1 %v2265_v12 }
  0x24   :  { %1818 = vmatprep.subr.bf16.mxu1 %v2266_v13 }
  0x27   :  { %1819 = vmatpush3.bf16.msra.mxu1 %v2267_v14 }
  0x28   :  { %1820 = vmatprep.subr.bf16.mxu1 %v2268_v15 }
  0x2a   :  { %2141 = vmatmul.mubr.bf16.gmra.mxu1 %v2635_v16 }
  0x2b   :  { %2144 = vmatprep.mubr.bf16.mxu1 %v2640_v17  ;;  %1821 = vmatpush3.bf16.msra.mxu1 %v2269_v18 }
  0x2c   :  { %1822 = vmatprep.subr.bf16.mxu1 %v2270_v19 }
  0x2f   :  { %1823 = vmatpush3.bf16.msra.mxu1 %v2271_v20 }
  0x30   :  { %1824 = vmatprep.subr.bf16.mxu1 %v2272_v21 }
  0x32   :  { %2145 = vmatmul.mubr.bf16.gmra.mxu1 %v2659_v22 }
  0x33   :  { %2148 = vmatprep.mubr.bf16.mxu1 %v2664_v23  ;;  %1825 = vmatpush3.bf16.msra.mxu1 %v2273_v24 }
  0x34   :  { %1826 = vmatprep.subr.bf16.mxu1 %v2274_v25 }
  0x37   :  { %1827 = vmatpush3.bf16.msra.mxu1 %v2275_v26 }
  0x38   :  { %1828 = vmatprep.subr.bf16.mxu1 %v2276_v28 }
  0x3a   :  { %2149 = vmatmul.mubr.bf16.gmra.mxu1 %v2680_v27 }
  0x3b   :  { %436 = vmatprep.mubr.bf16.mxu1 %v2255_v8  ;;  %1829 = vmatpush3.bf16.msra.mxu1 %v2277_v29 }
  0x3c   :  { %1830 = vmatprep.subr.bf16.mxu1 %v2278_v30 }
  0x3f   :  { %1831 = vmatpush3.bf16.msra.mxu1 %v2279_v31 }
  0xe2   :  { %v2138_v32 = vpop.f32.mrf.mxu1 }
  0xe4   :  { %v231_v33 = vpop.f32.mrf.mxu1 }
  0xe6   :  { %v2139_v34 = vpop.f32.mrf.mxu1 }
  0xe7   :  { %v295_v39 = vpack.c.bf16 %v2139_v34, %v2138_v32 }
  0xe8   :  { %v234_v35 = vpop.f32.mrf.mxu1 }
  0xe9   :  { %v294_v36 = vpack.c.bf16 %v234_v35, %v231_v33 }
  0xea   :  { %v2142_v37 = vpop.f32.mrf.mxu1 }
  0xeb   :  { %437 = vmatmul.mubr.bf16.vlgmr.msra.gmra.mxu1 %v294_v36 }
  0xec   :  { %444 = vmatprep.mubr.bf16.mxu1 %v2254_v7  ;;  %v247_v38 = vpop.f32.mrf.mxu1 }
  0xee   :  { %v2143_v40 = vpop.f32.mrf.mxu1 }
  0xef   :  { %v297_v45 = vpack.c.bf16 %v2143_v40, %v2142_v37 }
  0xf0   :  { %v250_v41 = vpop.f32.mrf.mxu1 }
  0xf1   :  { %v296_v42 = vpack.c.bf16 %v250_v41, %v247_v38 }
  0xf2   :  { %v2146_v43 = vpop.f32.mrf.mxu1 }
  0xf3   :  { %445 = vmatmul.mubr.bf16.gmra.mxu1 %v295_v39 }
  0xf4   :  { %452 = vmatprep.mubr.bf16.mxu1 %v2594_v6  ;;  %v263_v44 = vpop.f32.mrf.mxu1 }
  0xf6   :  { %v2147_v46 = vpop.f32.mrf.mxu1 }
  0xf7   :  { %v299_v51 = vpack.c.bf16 %v2147_v46, %v2146_v43 }
  0xf8   :  { %v266_v47 = vpop.f32.mrf.mxu1 }
  0xf9   :  { %v298_v48 = vpack.c.bf16 %v266_v47, %v263_v44 }
  0xfa   :  { %v2150_v49 = vpop.f32.mrf.mxu1 }
  0xfb   :  { %453 = vmatmul.mubr.bf16.gmra.mxu1 %v296_v42 }
  0xfc   :  { %460 = vmatprep.mubr.bf16.mxu1 %v2587_v5  ;;  %v279_v50 = vpop.f32.mrf.mxu1 }
  0xfe   :  { %v2151_v52 = vpop.f32.mrf.mxu1 }
  0xff   :  { %v301_v55 = vpack.c.bf16 %v2151_v52, %v2150_v49 }
 0x100   :  { %v282_v53 = vpop.f32.mrf.mxu1 }
 0x101   :  { %v300_v54 = vpack.c.bf16 %v282_v53, %v279_v50 }
 0x103   :  { %461 = vmatmul.mubr.bf16.gmra.mxu1 %v297_v45 }
 0x104   :  { %468 = vmatprep.mubr.bf16.mxu1 %v2572_v3 }
 0x10b   :  { %469 = vmatmul.mubr.bf16.gmra.mxu1 %v298_v48 }
 0x10c   :  { %476 = vmatprep.mubr.bf16.mxu1 %v2566_v2 }
 0x113   :  { %477 = vmatmul.mubr.bf16.gmra.mxu1 %v299_v51 }
 0x114   :  { %484 = vmatprep.mubr.bf16.mxu1 %v2558_v1 }
 0x11b   :  { %485 = vmatmul.mubr.bf16.gmra.mxu1 %v300_v54 }
 0x11c   :  { %492 = vmatprep.mubr.bf16.mxu1 %v2553_v0 }
 0x123   :  { %493 = vmatmul.mubr.bf16.gmra.mxu1 %v301_v55 }
 0x124   :  { %2200 = vmatprep.mubr.bf16.mxu1 %v2578_v4 }
 0x1ab   :  { %v1832_v56 = vpop.f32.mrf.mxu1 }
 0x1ad   :  { %v1833_v57 = vpop.f32.mrf.mxu1 }
 0x1ae   :  { %v1834_v59 = vadd.f32 %v1833_v57, %v1832_v56 }
 0x1af   :  { %v1835_v60 = vpop.f32.mrf.mxu1 }
 0x1b0   :  { %v439_v61 = vadd.f32 %v1834_v59, %v2705_v58 }
 0x1b1   :  { %v1836_v62 = vpop.f32.mrf.mxu1 }
 0x1b2   :  { %v1837_v63 = vadd.f32 %v1836_v62, %v1835_v60  ;;  %2328 = vtanh.f32 %v439_v61 }
 0x1b3   :  { %v1838_v1 = vpop.f32.mrf.mxu1 }
 0x1b4   :  { %v442_v0 = vadd.f32 %v1837_v63, %v2705_v58 }
 0x1b5   :  { %v1839_v2 = vpop.f32.mrf.mxu1 }
 0x1b6   :  { %2330 = vtanh.f32 %v442_v0  ;;  %v1840_v3 = vadd.f32 %v1839_v2, %v1838_v1 }
 0x1b7   :  { %v1841_v5 = vpop.f32.mrf.mxu1 }
 0x1b8   :  { %v447_v6 = vadd.f32 %v1840_v3, %v2705_v58 }
 0x1b9   :  { %v1842_v7 = vpop.f32.mrf.mxu1 }
 0x1ba   :  { %v1843_v8 = vadd.f32 %v1842_v7, %v1841_v5  ;;  %2332 = vtanh.f32 %v447_v6 }
 0x1bb   :  { %v1844_v9 = vpop.f32.mrf.mxu1 }
 0x1bc   :  { %v450_v12 = vadd.f32 %v1843_v8, %v2705_v58 }
 0x1bd   :  { %v1845_v13 = vpop.f32.mrf.mxu1 }
 0x1be   :  { %2334 = vtanh.f32 %v450_v12  ;;  %v1846_v5 = vadd.f32 %v1845_v13, %v1844_v9 }
 0x1bf   :  { %v1847_v14 = vpop.f32.mrf.mxu1  ;;  %v2329_v18 = vpop.eup %2328 }
 0x1c1   :  { %v1848_v15 = vpop.f32.mrf.mxu1 }
 0x1c2   :  { %v1849_v2 = vadd.f32 %v1848_v15, %v1847_v14 }
 0x1c3   :  { %v2331_v19 = vpop.eup %2330  ;;  %v1850_v20 = vpop.f32.mrf.mxu1 }
 0x1c4   :  { %v2711_v21 = vpack.c.bf16 %v2331_v19, %v2329_v18  ;;  %v458_v12 = vadd.f32 %v1849_v2, %v2705_v58  ;;  %v455_v19 = vadd.f32 %v1846_v5, %v2705_v58 }
 0x1c5   :  { %v1851_v24 = vpop.f32.mrf.mxu1 }
 0x1c6   :  { %v1852_v1 = vadd.f32 %v1851_v24, %v1850_v20 }
 0x1c7   :  { %v1853_v25 = vpop.f32.mrf.mxu1  ;;  %v2333_v28 = vpop.eup %2332 }
 0x1c8   :  { %v463_v6 = vadd.f32 %v1852_v1, %v2705_v58 }
 0x1c9   :  { %v1854_v26 = vpop.f32.mrf.mxu1 }
 0x1ca   :  { %v1855_v62 = vadd.f32 %v1854_v26, %v1853_v25 }
 0x1cb   :  { %v2335_v29 = vpop.eup %2334  ;;  %v1856_v30 = vpop.f32.mrf.mxu1 }
 0x1cc   :  { %v2713_v31 = vpack.c.bf16 %v2335_v29, %v2333_v28  ;;  %v466_v3 = vadd.f32 %v1855_v62, %v2705_v58 }
 0x1cd   :  { %v1857_v32 = vpop.f32.mrf.mxu1 }
 0x1ce   :  { %v1858_v60 = vadd.f32 %v1857_v32, %v1856_v30 }
 0x1cf   :  { %v1859_v33 = vpop.f32.mrf.mxu1 }
 0x1d0   :  { %v471_v0 = vadd.f32 %v1858_v60, %v2705_v58 }
 0x1d1   :  { %v1860_v34 = vpop.f32.mrf.mxu1 }
 0x1d2   :  { %v1861_v57 = vadd.f32 %v1860_v34, %v1859_v33 }
 0x1d3   :  { %v1862_v35 = vpop.f32.mrf.mxu1 }
 0x1d4   :  { %v474_v63 = vadd.f32 %v1861_v57, %v2705_v58 }
 0x1d5   :  { %v1863_v36 = vpop.f32.mrf.mxu1 }
 0x1d6   :  { %v1864_v54 = vadd.f32 %v1863_v36, %v1862_v35  ;;  %v2280_v35 = vld [vmem:[%s3128_s4 + $0x78] sm:$0xff]  }
 0x1d7   :  { %v1865_v37 = vpop.f32.mrf.mxu1  ;;  %v2281_v36 = vld [vmem:[%s3128_s4 + $0x38] sm:$0xff]  }
 0x1d8   :  { %v479_v61 = vadd.f32 %v1864_v54, %v2705_v58 }
 0x1d9   :  { %v1866_v38 = vpop.f32.mrf.mxu1 }
 0x1da   :  { %v1867_v52 = vadd.f32 %v1866_v38, %v1865_v37  ;;  %v2282_v37 = vld [vmem:[%s3128_s4 + $0x70] sm:$0xff]  }
 0x1db   :  { %v1868_v39 = vpop.f32.mrf.mxu1  ;;  %v2283_v38 = vld [vmem:[%s3128_s4 + $0x30] sm:$0xff]  }
 0x1dc   :  { %v482_v59 = vadd.f32 %v1867_v52, %v2705_v58 }
 0x1dd   :  { %v1869_v40 = vpop.f32.mrf.mxu1 }
 0x1de   :  { %v1870_v48 = vadd.f32 %v1869_v40, %v1868_v39  ;;  %v2284_v39 = vld [vmem:[%s3128_s4 + $0x68] sm:$0xff]  }
 0x1df   :  { %v1871_v41 = vpop.f32.mrf.mxu1  ;;  %v2285_v40 = vld [vmem:[%s3128_s4 + $0x28] sm:$0xff]  }
 0x1e0   :  { %v487_v55 = vadd.f32 %v1870_v48, %v2705_v58  ;;  %v2293_v48 = vld [vmem:[%s3128_s4 + $0x8] sm:$0xff]  }
 0x1e1   :  { %v1872_v42 = vpop.f32.mrf.mxu1 }
 0x1e2   :  { %v1873_v44 = vadd.f32 %v1872_v42, %v1871_v41  ;;  %v2286_v41 = vld [vmem:[%s3128_s4 + $0x60] sm:$0xff]  }
 0x1e3   :  { %v1874_v43 = vpop.f32.mrf.mxu1  ;;  %v2287_v42 = vld [vmem:[%s3128_s4 + $0x20] sm:$0xff]  }
 0x1e4   :  { %v490_v49 = vadd.f32 %v1873_v44, %v2705_v58  ;;  %v2289_v44 = vld [vmem:[%s3128_s4 + $0x18] sm:$0xff]  }
 0x1e5   :  { %v1875_v45 = vpop.f32.mrf.mxu1 }
 0x1e6   :  { %v1876_v46 = vadd.f32 %v1875_v45, %v1874_v43  ;;  %2336 = vtanh.f32 %v490_v49  ;;  %v2288_v43 = vld [vmem:[%s3128_s4 + $0x58] sm:$0xff]   ;;  %v2290_v45 = vld [vmem:[%s3128_s4 + $0x50] sm:$0xff]   ;;  %v2294_v49 = vld [vmem:[%s3128_s4 + $0x40] sm:$0xff]  }
 0x1e7   :  { %v1877_v47 = vpop.f32.mrf.mxu1 }
 0x1e8   :  { %v495_v50 = vadd.f32 %v1876_v46, %v2705_v58  ;;  %v2291_v46 = vld [vmem:[%s3128_s4 + $0x10] sm:$0xff]  }
 0x1e9   :  { %v1878_v51 = vpop.f32.mrf.mxu1 }
 0x1ea   :  { %v1879_v53 = vadd.f32 %v1878_v51, %v1877_v47  ;;  %2338 = vtanh.f32 %v495_v50  ;;  %v2292_v47 = vld [vmem:[%s3128_s4 + $0x48] sm:$0xff]   ;;  %v2295_v50 = vld [vmem:[%s3128_s4] sm:$0xff]  }
 0x1ec   :  { %v498_v56 = vadd.f32 %v1879_v53, %v2705_v58 }
 0x1ee   :  { %2340 = vtanh.f32 %v498_v56 }
 0x1ef   :  { %2342 = vtanh.f32 %v487_v55 }
 0x1f0   :  { %2344 = vtanh.f32 %v482_v59 }
 0x1f1   :  { %2346 = vtanh.f32 %v479_v61 }
 0x1f2   :  { %2348 = vtanh.f32 %v474_v63 }
 0x1f3   :  { %2350 = vtanh.f32 %v471_v0  ;;  %v2337_v7 = vpop.eup %2336 }
 0x1f4   :  { %2352 = vtanh.f32 %v466_v3 }
 0x1f5   :  { %2354 = vtanh.f32 %v463_v6 }
 0x1f6   :  { %2356 = vtanh.f32 %v458_v12 }
 0x1f7   :  { %v2339_v8 = vpop.eup %2338  ;;  %2358 = vtanh.f32 %v455_v19 }
 0x1fb   :  { %v2341_v18 = vpop.eup %2340 }
 0x1fc   :  { %v2727_v20 = vpack.c.bf16 %v2341_v18, %v2339_v8  ;;  %v2343_v24 = vpop.eup %2342 }
 0x1fd   :  { %v2730_v14 = vpack.c.bf16 %v2337_v7, %v2343_v24  ;;  %v2345_v9 = vpop.eup %2344 }
 0x1fe   :  { %2152 = vmatprep.subr.bf16.mxu0 %v2727_v20  ;;  %v2347_v13 = vpop.eup %2346 }
 0x1ff   :  { %2153 = vmatpush3.bf16.msra.mxu0 %v2727_v20  ;;  %v2734_v15 = vpack.c.bf16 %v2345_v9, %v2347_v13  ;;  %v2349_v25 = vpop.eup %2348  ;;  %v2817_v9 = vld [vmem:[%s3129_s5] ss:$0 sm:$0xff] }
 0x200   :  { %2154 = vmatprep.subr.bf16.mxu0 %v2730_v14  ;;  %v2351_v58 = vpop.eup %2350 }
 0x201   :  { %v2738_v26 = vpack.c.bf16 %v2349_v25, %v2351_v58  ;;  %v2353_v28 = vpop.eup %2352 }
 0x202   :  { %v2355_v29 = vpop.eup %2354 }
 0x203   :  { %2155 = vmatpush3.bf16.msra.mxu0 %v2730_v14  ;;  %v2742_v30 = vpack.c.bf16 %v2353_v28, %v2355_v29  ;;  %v2357_v32 = vpop.eup %2356 }
 0x204   :  { %2156 = vmatprep.subr.bf16.mxu0 %v2734_v15  ;;  %v2359_v33 = vpop.eup %2358 }
 0x205   :  { %v552_v34 = vpack.c.bf16 %v2357_v32, %v2359_v33 }
 0x207   :  { %2157 = vmatpush3.bf16.msra.mxu0 %v2734_v15 }
 0x208   :  { %2158 = vmatprep.subr.bf16.mxu0 %v2738_v26 }
 0x20b   :  { %2159 = vmatpush3.bf16.msra.mxu0 %v2738_v26 }
 0x20c   :  { %2160 = vmatprep.subr.bf16.mxu0 %v2742_v30 }
 0x20f   :  { %2161 = vmatpush3.bf16.msra.mxu0 %v2742_v30 }
 0x210   :  { %2162 = vmatprep.subr.bf16.mxu0 %v552_v34 }
 0x213   :  { %2163 = vmatpush3.bf16.msra.mxu0 %v552_v34 }
 0x214   :  { %2164 = vmatprep.subr.bf16.mxu0 %v2713_v31 }
 0x217   :  { %2165 = vmatpush3.bf16.msra.mxu0 %v2713_v31 }
 0x218   :  { %2166 = vmatprep.subr.bf16.mxu0 %v2711_v21 }
 0x21b   :  { %2167 = vmatpush3.bf16.msra.mxu0 %v2711_v21 }
 0x21c   :  { %1896 = vmatprep.subr.bf16.mxu0 %v2280_v35 }
 0x21e   :  { %2169 = vmatmul.mubr.bf16.vlgmr.msra.gmra.mxu0 %v2611_v10 }
 0x21f   :  { %2172 = vmatprep.mubr.bf16.mxu0 %v2616_v11  ;;  %1897 = vmatpush3.bf16.msra.mxu0 %v2281_v36 }
 0x220   :  { %1898 = vmatprep.subr.bf16.mxu0 %v2282_v37 }
 0x223   :  { %1899 = vmatpush3.bf16.msra.mxu0 %v2283_v38 }
 0x224   :  { %1900 = vmatprep.subr.bf16.mxu0 %v2284_v39 }
 0x226   :  { %2173 = vmatmul.mubr.bf16.gmra.mxu0 %v2635_v16 }
 0x227   :  { %2176 = vmatprep.mubr.bf16.mxu0 %v2640_v17  ;;  %1901 = vmatpush3.bf16.msra.mxu0 %v2285_v40 }
 0x228   :  { %1902 = vmatprep.subr.bf16.mxu0 %v2286_v41 }
 0x22b   :  { %1903 = vmatpush3.bf16.msra.mxu0 %v2287_v42 }
 0x22c   :  { %1904 = vmatprep.subr.bf16.mxu0 %v2288_v43 }
 0x22e   :  { %2177 = vmatmul.mubr.bf16.gmra.mxu0 %v2659_v22 }
 0x22f   :  { %2180 = vmatprep.mubr.bf16.mxu0 %v2664_v23  ;;  %1905 = vmatpush3.bf16.msra.mxu0 %v2289_v44 }
 0x230   :  { %1906 = vmatprep.subr.bf16.mxu0 %v2290_v45 }
 0x233   :  { %1907 = vmatpush3.bf16.msra.mxu0 %v2291_v46 }
 0x234   :  { %1908 = vmatprep.subr.bf16.mxu0 %v2292_v47 }
 0x236   :  { %2181 = vmatmul.mubr.bf16.gmra.mxu0 %v2680_v27 }
 0x237   :  { %797 = vmatprep.mubr.bf16.mxu0 %v2711_v21  ;;  %1909 = vmatpush3.bf16.msra.mxu0 %v2293_v48 }
 0x238   :  { %1910 = vmatprep.subr.bf16.mxu0 %v2294_v49 }
 0x23b   :  { %1911 = vmatpush3.bf16.msra.mxu0 %v2295_v50 }
 0x2de   :  { %v2170_v21 = vpop.f32.mrf.mxu0 }
 0x2e0   :  { %v592_v51 = vpop.f32.mrf.mxu0 }
 0x2e2   :  { %v2171_v52 = vpop.f32.mrf.mxu0 }
 0x2e3   :  { %v656_v57 = vpack.c.bf16 %v2171_v52, %v2170_v21 }
 0x2e4   :  { %v595_v53 = vpop.f32.mrf.mxu0 }
 0x2e5   :  { %v655_v54 = vpack.c.bf16 %v595_v53, %v592_v51 }
 0x2e6   :  { %v2174_v55 = vpop.f32.mrf.mxu0 }
 0x2e7   :  { %798 = vmatmul.mubr.bf16.vlgmr.msra.gmra.mxu0 %v655_v54 }
 0x2e8   :  { %805 = vmatprep.mubr.bf16.mxu0 %v2713_v31  ;;  %v608_v56 = vpop.f32.mrf.mxu0 }
 0x2ea   :  { %v2175_v59 = vpop.f32.mrf.mxu0 }
 0x2eb   :  { %v658_v1 = vpack.c.bf16 %v2175_v59, %v2174_v55 }
 0x2ec   :  { %v611_v60 = vpop.f32.mrf.mxu0 }
 0x2ed   :  { %v657_v61 = vpack.c.bf16 %v611_v60, %v608_v56 }
 0x2ee   :  { %v2178_v62 = vpop.f32.mrf.mxu0 }
 0x2ef   :  { %806 = vmatmul.mubr.bf16.gmra.mxu0 %v656_v57 }
 0x2f0   :  { %813 = vmatprep.mubr.bf16.mxu0 %v552_v34  ;;  %v624_v63 = vpop.f32.mrf.mxu0 }
 0x2f2   :  { %v2179_v0 = vpop.f32.mrf.mxu0 }
 0x2f3   :  { %v660_v6 = vpack.c.bf16 %v2179_v0, %v2178_v62 }
 0x2f4   :  { %v627_v2 = vpop.f32.mrf.mxu0 }
 0x2f5   :  { %v659_v3 = vpack.c.bf16 %v627_v2, %v624_v63 }
 0x2f6   :  { %v2182_v31 = vpop.f32.mrf.mxu0 }
 0x2f7   :  { %814 = vmatmul.mubr.bf16.gmra.mxu0 %v657_v61 }
 0x2f8   :  { %821 = vmatprep.mubr.bf16.mxu0 %v2742_v30  ;;  %v640_v5 = vpop.f32.mrf.mxu0 }
 0x2fa   :  { %v2183_v7 = vpop.f32.mrf.mxu0 }
 0x2fb   :  { %v662_v18 = vpack.c.bf16 %v2183_v7, %v2182_v31 }
 0x2fc   :  { %v643_v8 = vpop.f32.mrf.mxu0 }
 0x2fd   :  { %v661_v12 = vpack.c.bf16 %v643_v8, %v640_v5 }
 0x2ff   :  { %822 = vmatmul.mubr.bf16.gmra.mxu0 %v658_v1 }
 0x300   :  { %829 = vmatprep.mubr.bf16.mxu0 %v2738_v26 }
 0x307   :  { %830 = vmatmul.mubr.bf16.gmra.mxu0 %v659_v3 }
 0x308   :  { %837 = vmatprep.mubr.bf16.mxu0 %v2734_v15 }
 0x30f   :  { %838 = vmatmul.mubr.bf16.gmra.mxu0 %v660_v6 }
 0x310   :  { %845 = vmatprep.mubr.bf16.mxu0 %v2730_v14 }
 0x317   :  { %846 = vmatmul.mubr.bf16.gmra.mxu0 %v661_v12 }
 0x318   :  { %853 = vmatprep.mubr.bf16.mxu0 %v2727_v20 }
 0x31f   :  { %854 = vmatmul.mubr.bf16.gmra.mxu0 %v662_v18 }
 0x320   :  { %2232 = vmatprep.mubr.bf16.mxu0 %v2578_v4 }
 0x3a7   :  { %v1912_v19 = vpop.f32.mrf.mxu0 }
 0x3a9   :  { %v1913_v24 = vpop.f32.mrf.mxu0 }
 0x3aa   :  { %v1914_v13 = vadd.f32 %v1913_v24, %v1912_v19 }
 0x3ab   :  { %v1915_v15 = vpop.f32.mrf.mxu0 }
 0x3ac   :  { %v800_v14 = vadd.f32 %v1914_v13, %v2817_v9 }
 0x3ad   :  { %v1916_v25 = vpop.f32.mrf.mxu0 }
 0x3ae   :  { %v1917_v58 = vadd.f32 %v1916_v25, %v1915_v15  ;;  %2360 = vtanh.f32 %v800_v14 }
 0x3af   :  { %v1918_v26 = vpop.f32.mrf.mxu0 }
 0x3b0   :  { %v803_v20 = vadd.f32 %v1917_v58, %v2817_v9 }
 0x3b1   :  { %v1919_v28 = vpop.f32.mrf.mxu0 }
 0x3b2   :  { %2362 = vtanh.f32 %v803_v20  ;;  %v1920_v4 = vadd.f32 %v1919_v28, %v1918_v26 }
 0x3b3   :  { %v1921_v29 = vpop.f32.mrf.mxu0 }
 0x3b4   :  { %v808_v30 = vadd.f32 %v1920_v4, %v2817_v9 }
 0x3b5   :  { %v1922_v32 = vpop.f32.mrf.mxu0 }
 0x3b6   :  { %v1923_v33 = vadd.f32 %v1922_v32, %v1921_v29  ;;  %2364 = vtanh.f32 %v808_v30 }
 0x3b7   :  { %v1924_v34 = vpop.f32.mrf.mxu0 }
 0x3b8   :  { %v811_v35 = vadd.f32 %v1923_v33, %v2817_v9 }
 0x3b9   :  { %v1925_v36 = vpop.f32.mrf.mxu0 }
 0x3ba   :  { %2366 = vtanh.f32 %v811_v35  ;;  %v1926_v4 = vadd.f32 %v1925_v36, %v1924_v34 }
 0x3bb   :  { %v1927_v37 = vpop.f32.mrf.mxu0  ;;  %v2361_v39 = vpop.eup %2360 }
 0x3bd   :  { %v1928_v38 = vpop.f32.mrf.mxu0 }
 0x3be   :  { %v1929_v20 = vadd.f32 %v1928_v38, %v1927_v37 }
 0x3bf   :  { %v2363_v40 = vpop.eup %2362  ;;  %v1930_v41 = vpop.f32.mrf.mxu0 }
 0x3c0   :  { %v2823_v42 = vpack.c.bf16 %v2363_v40, %v2361_v39  ;;  %v819_v33 = vadd.f32 %v1929_v20, %v2817_v9  ;;  %v816_v39 = vadd.f32 %v1926_v4, %v2817_v9  ;;  %v2928_v4 = vld [vmem:[%s3131_s7] ss:$0 sm:$0xff] }
 0x3c1   :  { %v1931_v43 = vpop.f32.mrf.mxu0 }
 0x3c2   :  { %v1932_v58 = vadd.f32 %v1931_v43, %v1930_v41 }
 0x3c3   :  { %v1933_v44 = vpop.f32.mrf.mxu0  ;;  %v2365_v46 = vpop.eup %2364 }
 0x3c4   :  { %v824_v29 = vadd.f32 %v1932_v58, %v2817_v9 }
 0x3c5   :  { %v1934_v45 = vpop.f32.mrf.mxu0 }
 0x3c6   :  { %v1935_v14 = vadd.f32 %v1934_v45, %v1933_v44 }
 0x3c7   :  { %v2367_v47 = vpop.eup %2366  ;;  %v1936_v48 = vpop.f32.mrf.mxu0 }
 0x3c8   :  { %v2825_v49 = vpack.c.bf16 %v2367_v47, %v2365_v46  ;;  %v827_v28 = vadd.f32 %v1935_v14, %v2817_v9 }
 0x3c9   :  { %v1937_v50 = vpop.f32.mrf.mxu0 }
 0x3ca   :  { %v1938_v13 = vadd.f32 %v1937_v50, %v1936_v48 }
 0x3cb   :  { %v1939_v21 = vpop.f32.mrf.mxu0 }
 0x3cc   :  { %v832_v26 = vadd.f32 %v1938_v13, %v2817_v9 }
 0x3cd   :  { %v1940_v51 = vpop.f32.mrf.mxu0 }
 0x3ce   :  { %v1941_v19 = vadd.f32 %v1940_v51, %v1939_v21  ;;  %v2296_v51 = vld [vmem:[%s3130_s6 + $0x78] sm:$0xff]  }
 0x3cf   :  { %v1942_v52 = vpop.f32.mrf.mxu0 }
 0x3d0   :  { %v835_v25 = vadd.f32 %v1941_v19, %v2817_v9 }
 0x3d1   :  { %v1943_v53 = vpop.f32.mrf.mxu0 }
 0x3d2   :  { %v1944_v8 = vadd.f32 %v1943_v53, %v1942_v52  ;;  %v2297_v52 = vld [vmem:[%s3130_s6 + $0x38] sm:$0xff]   ;;  %v2298_v53 = vld [vmem:[%s3130_s6 + $0x70] sm:$0xff]  }
 0x3d3   :  { %v1945_v54 = vpop.f32.mrf.mxu0 }
 0x3d4   :  { %v840_v15 = vadd.f32 %v1944_v8, %v2817_v9 }
 0x3d5   :  { %v1946_v55 = vpop.f32.mrf.mxu0 }
 0x3d6   :  { %v1947_v6 = vadd.f32 %v1946_v55, %v1945_v54  ;;  %v2299_v54 = vld [vmem:[%s3130_s6 + $0x30] sm:$0xff]   ;;  %v2300_v55 = vld [vmem:[%s3130_s6 + $0x68] sm:$0xff]  }
 0x3d7   :  { %v1948_v56 = vpop.f32.mrf.mxu0 }
 0x3d8   :  { %v843_v24 = vadd.f32 %v1947_v6, %v2817_v9 }
 0x3d9   :  { %v1949_v57 = vpop.f32.mrf.mxu0 }
 0x3da   :  { %v1950_v2 = vadd.f32 %v1949_v57, %v1948_v56  ;;  %v2301_v56 = vld [vmem:[%s3130_s6 + $0x28] sm:$0xff]   ;;  %v2304_v57 = vld [vmem:[%s3130_s6 + $0x58] sm:$0xff]  }
 0x3db   :  { %v1951_v59 = vpop.f32.mrf.mxu0 }
 0x3dc   :  { %v848_v12 = vadd.f32 %v1950_v2, %v2817_v9 }
 0x3dd   :  { %v1952_v60 = vpop.f32.mrf.mxu0 }
 0x3de   :  { %v1953_v62 = vadd.f32 %v1952_v60, %v1951_v59  ;;  %v2305_v59 = vld [vmem:[%s3130_s6 + $0x18] sm:$0xff]   ;;  %v2308_v60 = vld [vmem:[%s3130_s6 + $0x48] sm:$0xff]  }
 0x3df   :  { %v1954_v61 = vpop.f32.mrf.mxu0 }
 0x3e0   :  { %v851_v3 = vadd.f32 %v1953_v62, %v2817_v9 }
 0x3e1   :  { %v1955_v63 = vpop.f32.mrf.mxu0 }
 0x3e2   :  { %v1956_v1 = vadd.f32 %v1955_v63, %v1954_v61  ;;  %2368 = vtanh.f32 %v851_v3 }
 0x3e3   :  { %v1957_v0 = vpop.f32.mrf.mxu0 }
 0x3e4   :  { %v856_v31 = vadd.f32 %v1956_v1, %v2817_v9 }
 0x3e5   :  { %v1958_v5 = vpop.f32.mrf.mxu0 }
 0x3e6   :  { %v1959_v7 = vadd.f32 %v1958_v5, %v1957_v0  ;;  %2370 = vtanh.f32 %v856_v31 }
 0x3e8   :  { %v859_v18 = vadd.f32 %v1959_v7, %v2817_v9 }
 0x3ea   :  { %2372 = vtanh.f32 %v859_v18 }
 0x3eb   :  { %2374 = vtanh.f32 %v848_v12 }
 0x3ec   :  { %2376 = vtanh.f32 %v843_v24 }
 0x3ed   :  { %2378 = vtanh.f32 %v840_v15 }
 0x3ee   :  { %2380 = vtanh.f32 %v835_v25 }
 0x3ef   :  { %2382 = vtanh.f32 %v832_v26  ;;  %v2369_v30 = vpop.eup %2368 }
 0x3f0   :  { %2384 = vtanh.f32 %v827_v28 }
 0x3f1   :  { %2386 = vtanh.f32 %v824_v29 }
 0x3f2   :  { %2388 = vtanh.f32 %v819_v33 }
 0x3f3   :  { %v2371_v32 = vpop.eup %2370  ;;  %2390 = vtanh.f32 %v816_v39 }
 0x3f7   :  { %v2373_v35 = vpop.eup %2372 }
 0x3f8   :  { %v2839_v40 = vpack.c.bf16 %v2373_v35, %v2371_v32  ;;  %v2375_v41 = vpop.eup %2374 }
 0x3f9   :  { %v2842_v37 = vpack.c.bf16 %v2369_v30, %v2375_v41  ;;  %v2377_v34 = vpop.eup %2376 }
 0x3fa   :  { %2184 = vmatprep.subr.bf16.mxu1 %v2839_v40  ;;  %v2379_v36 = vpop.eup %2378 }
 0x3fb   :  { %2185 = vmatpush3.bf16.msra.mxu1 %v2839_v40  ;;  %v2846_v38 = vpack.c.bf16 %v2377_v34, %v2379_v36  ;;  %v2381_v43 = vpop.eup %2380 }
 0x3fc   :  { %2186 = vmatprep.subr.bf16.mxu1 %v2842_v37  ;;  %v2383_v9 = vpop.eup %2382 }
 0x3fd   :  { %v2850_v44 = vpack.c.bf16 %v2381_v43, %v2383_v9  ;;  %v2385_v45 = vpop.eup %2384 }
 0x3fe   :  { %v2387_v46 = vpop.eup %2386 }
 0x3ff   :  { %2187 = vmatpush3.bf16.msra.mxu1 %v2842_v37  ;;  %v2854_v47 = vpack.c.bf16 %v2385_v45, %v2387_v46  ;;  %v2389_v48 = vpop.eup %2388 }
 0x400   :  { %2188 = vmatprep.subr.bf16.mxu1 %v2846_v38  ;;  %v2391_v50 = vpop.eup %2390 }
 0x401   :  { %v913_v21 = vpack.c.bf16 %v2389_v48, %v2391_v50 }
 0x403   :  { %2189 = vmatpush3.bf16.msra.mxu1 %v2846_v38 }
 0x404   :  { %2190 = vmatprep.subr.bf16.mxu1 %v2850_v44 }
 0x407   :  { %2191 = vmatpush3.bf16.msra.mxu1 %v2850_v44 }
 0x408   :  { %2192 = vmatprep.subr.bf16.mxu1 %v2854_v47 }
 0x40b   :  { %2193 = vmatpush3.bf16.msra.mxu1 %v2854_v47 }
 0x40c   :  { %2194 = vmatprep.subr.bf16.mxu1 %v913_v21 }
 0x40f   :  { %2195 = vmatpush3.bf16.msra.mxu1 %v913_v21 }
 0x410   :  { %2196 = vmatprep.subr.bf16.mxu1 %v2825_v49 }
 0x413   :  { %2197 = vmatpush3.bf16.msra.mxu1 %v2825_v49 }
 0x414   :  { %2198 = vmatprep.subr.bf16.mxu1 %v2823_v42 }
 0x417   :  { %2199 = vmatpush3.bf16.msra.mxu1 %v2823_v42 }
 0x418   :  { %1976 = vmatprep.subr.bf16.mxu1 %v2296_v51 }
 0x41a   :  { %2201 = vmatmul.mubr.bf16.vlgmr.msra.gmra.mxu1 %v2611_v10  ;;  %v2302_v10 = vld [vmem:[%s3130_s6 + $0x60] sm:$0xff]  }
 0x41b   :  { %2204 = vmatprep.mubr.bf16.mxu1 %v2616_v11  ;;  %1977 = vmatpush3.bf16.msra.mxu1 %v2297_v52  ;;  %v2303_v11 = vld [vmem:[%s3130_s6 + $0x20] sm:$0xff]  }
 0x41c   :  { %1978 = vmatprep.subr.bf16.mxu1 %v2298_v53 }
 0x41f   :  { %1979 = vmatpush3.bf16.msra.mxu1 %v2299_v54 }
 0x420   :  { %1980 = vmatprep.subr.bf16.mxu1 %v2300_v55 }
 0x422   :  { %2205 = vmatmul.mubr.bf16.gmra.mxu1 %v2635_v16  ;;  %v2306_v16 = vld [vmem:[%s3130_s6 + $0x50] sm:$0xff]  }
 0x423   :  { %2208 = vmatprep.mubr.bf16.mxu1 %v2640_v17  ;;  %1981 = vmatpush3.bf16.msra.mxu1 %v2301_v56  ;;  %v2307_v17 = vld [vmem:[%s3130_s6 + $0x10] sm:$0xff]  }
 0x424   :  { %1982 = vmatprep.subr.bf16.mxu1 %v2302_v10 }
 0x427   :  { %1983 = vmatpush3.bf16.msra.mxu1 %v2303_v11 }
 0x428   :  { %1984 = vmatprep.subr.bf16.mxu1 %v2304_v57 }
 0x42a   :  { %2209 = vmatmul.mubr.bf16.gmra.mxu1 %v2659_v22  ;;  %v2309_v22 = vld [vmem:[%s3130_s6 + $0x8] sm:$0xff]  }
 0x42b   :  { %2212 = vmatprep.mubr.bf16.mxu1 %v2664_v23  ;;  %1985 = vmatpush3.bf16.msra.mxu1 %v2305_v59  ;;  %v2310_v23 = vld [vmem:[%s3130_s6 + $0x40] sm:$0xff]  }
 0x42c   :  { %1986 = vmatprep.subr.bf16.mxu1 %v2306_v16 }
 0x42f   :  { %1987 = vmatpush3.bf16.msra.mxu1 %v2307_v17 }
 0x430   :  { %1988 = vmatprep.subr.bf16.mxu1 %v2308_v60 }
 0x432   :  { %2213 = vmatmul.mubr.bf16.gmra.mxu1 %v2680_v27  ;;  %v2311_v27 = vld [vmem:[%s3130_s6] sm:$0xff]  }
 0x433   :  { %1158 = vmatprep.mubr.bf16.mxu1 %v2823_v42  ;;  %1989 = vmatpush3.bf16.msra.mxu1 %v2309_v22 }
 0x434   :  { %1990 = vmatprep.subr.bf16.mxu1 %v2310_v23 }
 0x437   :  { %1991 = vmatpush3.bf16.msra.mxu1 %v2311_v27 }
 0x4da   :  { %v2202_v42 = vpop.f32.mrf.mxu1 }
 0x4dc   :  { %v953_v61 = vpop.f32.mrf.mxu1 }
 0x4de   :  { %v2203_v62 = vpop.f32.mrf.mxu1 }
 0x4df   :  { %v1017_v3 = vpack.c.bf16 %v2203_v62, %v2202_v42 }
 0x4e0   :  { %v956_v63 = vpop.f32.mrf.mxu1 }
 0x4e1   :  { %v1016_v1 = vpack.c.bf16 %v956_v63, %v953_v61 }
 0x4e2   :  { %v2206_v0 = vpop.f32.mrf.mxu1 }
 0x4e3   :  { %1159 = vmatmul.mubr.bf16.vlgmr.msra.gmra.mxu1 %v1016_v1 }
 0x4e4   :  { %1166 = vmatprep.mubr.bf16.mxu1 %v2825_v49  ;;  %v969_v2 = vpop.f32.mrf.mxu1 }
 0x4e6   :  { %v2207_v31 = vpop.f32.mrf.mxu1 }
 0x4e7   :  { %v1019_v12 = vpack.c.bf16 %v2207_v31, %v2206_v0 }
 0x4e8   :  { %v972_v5 = vpop.f32.mrf.mxu1 }
 0x4e9   :  { %v1018_v6 = vpack.c.bf16 %v972_v5, %v969_v2 }
 0x4ea   :  { %v2210_v7 = vpop.f32.mrf.mxu1 }
 0x4eb   :  { %1167 = vmatmul.mubr.bf16.gmra.mxu1 %v1017_v3 }
 0x4ec   :  { %1174 = vmatprep.mubr.bf16.mxu1 %v913_v21  ;;  %v985_v8 = vpop.f32.mrf.mxu1 }
 0x4ee   :  { %v2211_v18 = vpop.f32.mrf.mxu1 }
 0x4ef   :  { %v1021_v15 = vpack.c.bf16 %v2211_v18, %v2210_v7 }
 0x4f0   :  { %v988_v19 = vpop.f32.mrf.mxu1 }
 0x4f1   :  { %v1020_v24 = vpack.c.bf16 %v988_v19, %v985_v8 }
 0x4f2   :  { %v2214_v49 = vpop.f32.mrf.mxu1 }
 0x4f3   :  { %1175 = vmatmul.mubr.bf16.gmra.mxu1 %v1018_v6 }
 0x4f4   :  { %1182 = vmatprep.mubr.bf16.mxu1 %v2854_v47  ;;  %v1001_v13 = vpop.f32.mrf.mxu1 }
 0x4f6   :  { %v2215_v14 = vpop.f32.mrf.mxu1 }
 0x4f7   :  { %v1023_v26 = vpack.c.bf16 %v2215_v14, %v2214_v49 }
 0x4f8   :  { %v1004_v25 = vpop.f32.mrf.mxu1 }
 0x4f9   :  { %v1022_v58 = vpack.c.bf16 %v1004_v25, %v1001_v13 }
 0x4fb   :  { %1183 = vmatmul.mubr.bf16.gmra.mxu1 %v1019_v12 }
 0x4fc   :  { %1190 = vmatprep.mubr.bf16.mxu1 %v2850_v44 }
 0x503   :  { %1191 = vmatmul.mubr.bf16.gmra.mxu1 %v1020_v24 }
 0x504   :  { %1198 = vmatprep.mubr.bf16.mxu1 %v2846_v38 }
 0x50b   :  { %1199 = vmatmul.mubr.bf16.gmra.mxu1 %v1021_v15 }
 0x50c   :  { %1206 = vmatprep.mubr.bf16.mxu1 %v2842_v37 }
 0x513   :  { %1207 = vmatmul.mubr.bf16.gmra.mxu1 %v1022_v58 }
 0x514   :  { %1214 = vmatprep.mubr.bf16.mxu1 %v2839_v40 }
 0x51b   :  { %1215 = vmatmul.mubr.bf16.gmra.mxu1 %v1023_v26 }
 0x5a3   :  { %v1992_v20 = vpop.f32.mrf.mxu1 }
 0x5a5   :  { %v1993_v28 = vpop.f32.mrf.mxu1 }
 0x5a6   :  { %v1994_v29 = vadd.f32 %v1993_v28, %v1992_v20 }
 0x5a7   :  { %v1995_v30 = vpop.f32.mrf.mxu1 }
 0x5a8   :  { %v1161_v32 = vadd.f32 %v1994_v29, %v2928_v4 }
 0x5a9   :  { %v1996_v33 = vpop.f32.mrf.mxu1 }
 0x5aa   :  { %v1997_v35 = vadd.f32 %v1996_v33, %v1995_v30  ;;  %2392 = vtanh.f32 %v1161_v32 }
 0x5ab   :  { %v1998_v39 = vpop.f32.mrf.mxu1 }
 0x5ac   :  { %v1164_v41 = vadd.f32 %v1997_v35, %v2928_v4 }
 0x5ad   :  { %v1999_v40 = vpop.f32.mrf.mxu1 }
 0x5ae   :  { %2394 = vtanh.f32 %v1164_v41  ;;  %v2000_v37 = vadd.f32 %v1999_v40, %v1998_v39 }
 0x5af   :  { %v2001_v34 = vpop.f32.mrf.mxu1 }
 0x5b0   :  { %v1169_v36 = vadd.f32 %v2000_v37, %v2928_v4 }
 0x5b1   :  { %v2002_v38 = vpop.f32.mrf.mxu1 }
 0x5b2   :  { %v2003_v43 = vadd.f32 %v2002_v38, %v2001_v34  ;;  %2396 = vtanh.f32 %v1169_v36 }
 0x5b3   :  { %v2004_v9 = vpop.f32.mrf.mxu1 }
 0x5b4   :  { %v1172_v44 = vadd.f32 %v2003_v43, %v2928_v4 }
 0x5b5   :  { %v2005_v45 = vpop.f32.mrf.mxu1 }
 0x5b6   :  { %2398 = vtanh.f32 %v1172_v44  ;;  %v2006_v30 = vadd.f32 %v2005_v45, %v2004_v9 }
 0x5b7   :  { %v2007_v46 = vpop.f32.mrf.mxu1  ;;  %v2393_v48 = vpop.eup %2392 }
 0x5b8   :  { %v1177_v40 = vadd.f32 %v2006_v30, %v2928_v4 }
 0x5b9   :  { %v2008_v47 = vpop.f32.mrf.mxu1 }
 0x5ba   :  { %v2009_v28 = vadd.f32 %v2008_v47, %v2007_v46 }
 0x5bb   :  { %v2395_v50 = vpop.eup %2394  ;;  %v2010_v21 = vpop.f32.mrf.mxu1 }
 0x5bc   :  { %v2934_v51 = vpack.c.bf16 %v2395_v50, %v2393_v48  ;;  %v1180_v39 = vadd.f32 %v2009_v28, %v2928_v4 }
 0x5bd   :  { %v2011_v52 = vpop.f32.mrf.mxu1 }
 0x5be   :  { %v2012_v26 = vadd.f32 %v2011_v52, %v2010_v21 }
 0x5bf   :  { %v2013_v53 = vpop.f32.mrf.mxu1  ;;  %v2397_v55 = vpop.eup %2396 }
 0x5c0   :  { %v1185_v32 = vadd.f32 %v2012_v26, %v2928_v4 }
 0x5c1   :  { %v2014_v54 = vpop.f32.mrf.mxu1 }
 0x5c2   :  { %v2015_v25 = vadd.f32 %v2014_v54, %v2013_v53  ;;  %v2312_v53 = vld [vmem:[%s3132_s8 + $0x78] sm:$0xff]  }
 0x5c3   :  { %v2399_v56 = vpop.eup %2398  ;;  %v2016_v10 = vpop.f32.mrf.mxu1  ;;  %v2313_v54 = vld [vmem:[%s3132_s8 + $0x38] sm:$0xff]  }
 0x5c4   :  { %v2936_v11 = vpack.c.bf16 %v2399_v56, %v2397_v55  ;;  %v1188_v29 = vadd.f32 %v2015_v25, %v2928_v4  ;;  %v2314_v55 = vld [vmem:[%s3132_s8 + $0x70] sm:$0xff]   ;;  %v2488_v56 = vld [vmem:[%s3125_s0 + $0x8] sm:$0xff]  }
 0x5c5   :  { %v2017_v57 = vpop.f32.mrf.mxu1 }
 0x5c6   :  { %v2018_v15 = vadd.f32 %v2017_v57, %v2016_v10  ;;  %v2489_v10 = vld [vmem:[%s3125_s0 + $0x10] sm:$0xff]  }
 0x5c7   :  { %v2019_v59 = vpop.f32.mrf.mxu1  ;;  %v2315_v57 = vld [vmem:[%s3132_s8 + $0x30] sm:$0xff]  }
 0x5c8   :  { %v1193_v20 = vadd.f32 %v2018_v15, %v2928_v4 }
 0x5c9   :  { %v2020_v16 = vpop.f32.mrf.mxu1 }
 0x5ca   :  { %v2021_v49 = vadd.f32 %v2020_v16, %v2019_v59  ;;  %v2316_v59 = vld [vmem:[%s3132_s8 + $0x68] sm:$0xff]  }
 0x5cb   :  { %v2022_v17 = vpop.f32.mrf.mxu1  ;;  %v2317_v16 = vld [vmem:[%s3132_s8 + $0x28] sm:$0xff]  }
 0x5cc   :  { %v1196_v58 = vadd.f32 %v2021_v49, %v2928_v4 }
 0x5cd   :  { %v2023_v60 = vpop.f32.mrf.mxu1 }
 0x5ce   :  { %v2024_v18 = vadd.f32 %v2023_v60, %v2022_v17  ;;  %v2318_v17 = vld [vmem:[%s3132_s8 + $0x60] sm:$0xff]   ;;  %v2490_v60 = vld [vmem:[%s3125_s0 + $0x18] sm:$0xff]  }
 0x5cf   :  { %v2025_v22 = vpop.f32.mrf.mxu1 }
 0x5d0   :  { %v1201_v14 = vadd.f32 %v2024_v18, %v2928_v4 }
 0x5d1   :  { %v2026_v23 = vpop.f32.mrf.mxu1 }
 0x5d2   :  { %v2027_v8 = vadd.f32 %v2026_v23, %v2025_v22  ;;  %v2491_v22 = vld [vmem:[%s3125_s0 + $0x20] sm:$0xff]  }
 0x5d3   :  { %v2028_v27 = vpop.f32.mrf.mxu1  ;;  %v2319_v23 = vld [vmem:[%s3132_s8 + $0x20] sm:$0xff]  }
 0x5d4   :  { %v1204_v13 = vadd.f32 %v2027_v8, %v2928_v4 }
 0x5d5   :  { %v2029_v42 = vpop.f32.mrf.mxu1 }
 0x5d6   :  { %v2030_v31 = vadd.f32 %v2029_v42, %v2028_v27  ;;  %v2320_v27 = vld [vmem:[%s3132_s8 + $0x58] sm:$0xff]  }
 0x5d7   :  { %v2031_v61 = vpop.f32.mrf.mxu1  ;;  %v2321_v42 = vld [vmem:[%s3132_s8 + $0x18] sm:$0xff]  }
 0x5d8   :  { %v1209_v19 = vadd.f32 %v2030_v31, %v2928_v4  ;;  %v2326_v31 = vld [vmem:[%s3132_s8 + $0x40] sm:$0xff]  }
 0x5d9   :  { %v2032_v62 = vpop.f32.mrf.mxu1 }
 0x5da   :  { %v2033_v1 = vadd.f32 %v2032_v62, %v2031_v61  ;;  %v2322_v61 = vld [vmem:[%s3132_s8 + $0x50] sm:$0xff]   ;;  %v2492_v62 = vld [vmem:[%s3125_s0 + $0x28] sm:$0xff]  }
 0x5db   :  { %v2034_v63 = vpop.f32.mrf.mxu1 }
 0x5dc   :  { %v1212_v5 = vadd.f32 %v2033_v1, %v2928_v4  ;;  %v2323_v1 = vld [vmem:[%s3132_s8 + $0x10] sm:$0xff]  }
 0x5dd   :  { %v2035_v0 = vpop.f32.mrf.mxu1 }
 0x5de   :  { %v2036_v2 = vadd.f32 %v2035_v0, %v2034_v63  ;;  %2400 = vtanh.f32 %v1212_v5  ;;  %v2493_v63 = vld [vmem:[%s3125_s0 + $0x30] sm:$0xff]   ;;  %v2494_v0 = vld [vmem:[%s3125_s0 + $0x38] sm:$0xff]   ;;  %v2327_v5 = vld [vmem:[%s3132_s8] sm:$0xff]  }
 0x5df   :  { %v2037_v3 = vpop.f32.mrf.mxu1 }
 0x5e0   :  { %v1217_v6 = vadd.f32 %v2036_v2, %v2928_v4  ;;  %v2324_v2 = vld [vmem:[%s3132_s8 + $0x48] sm:$0xff]  }
 0x5e1   :  { %v2038_v7 = vpop.f32.mrf.mxu1 }
 0x5e2   :  { %v2039_v12 = vadd.f32 %v2038_v7, %v2037_v3  ;;  %2402 = vtanh.f32 %v1217_v6  ;;  %v2325_v3 = vld [vmem:[%s3132_s8 + $0x8] sm:$0xff]  }
 0x5e4   :  { %v1220_v24 = vadd.f32 %v2039_v12, %v2928_v4 }
 0x5e6   :  { %2404 = vtanh.f32 %v1220_v24 }
 0x5e7   :  { %2406 = vtanh.f32 %v1209_v19 }
 0x5e8   :  { %2408 = vtanh.f32 %v1204_v13 }
 0x5e9   :  { %2410 = vtanh.f32 %v1201_v14 }
 0x5ea   :  { %2412 = vtanh.f32 %v1196_v58 }
 0x5eb   :  { %2414 = vtanh.f32 %v1193_v20  ;;  %v2401_v33 = vpop.eup %2400 }
 0x5ec   :  { %2416 = vtanh.f32 %v1188_v29 }
 0x5ed   :  { %2418 = vtanh.f32 %v1185_v32 }
 0x5ee   :  { %2420 = vtanh.f32 %v1180_v39 }
 0x5ef   :  { %v2403_v35 = vpop.eup %2402  ;;  %2422 = vtanh.f32 %v1177_v40  ;;  %v3058_v40 = vld [vmem:[%s3133_s9] ss:$0 sm:$0xff] }
 0x5f3   :  { %v2405_v41 = vpop.eup %2404 }
 0x5f4   :  { %v2950_v37 = vpack.c.bf16 %v2405_v41, %v2403_v35  ;;  %v2407_v34 = vpop.eup %2406 }
 0x5f5   :  { %v2953_v36 = vpack.c.bf16 %v2401_v33, %v2407_v34  ;;  %v2409_v38 = vpop.eup %2408 }
 0x5f6   :  { %2216 = vmatprep.subr.bf16.mxu0 %v2950_v37  ;;  %v2411_v43 = vpop.eup %2410 }
 0x5f7   :  { %2217 = vmatpush3.bf16.msra.mxu0 %v2950_v37  ;;  %v2957_v9 = vpack.c.bf16 %v2409_v38, %v2411_v43  ;;  %v2413_v44 = vpop.eup %2412 }
 0x5f8   :  { %2218 = vmatprep.subr.bf16.mxu0 %v2953_v36  ;;  %v2415_v4 = vpop.eup %2414 }
 0x5f9   :  { %v2961_v45 = vpack.c.bf16 %v2413_v44, %v2415_v4  ;;  %v2417_v46 = vpop.eup %2416 }
 0x5fa   :  { %v2419_v47 = vpop.eup %2418 }
 0x5fb   :  { %2219 = vmatpush3.bf16.msra.mxu0 %v2953_v36  ;;  %v2965_v48 = vpack.c.bf16 %v2417_v46, %v2419_v47  ;;  %v2421_v50 = vpop.eup %2420 }
 0x5fc   :  { %2220 = vmatprep.subr.bf16.mxu0 %v2957_v9  ;;  %v2423_v21 = vpop.eup %2422 }
 0x5fd   :  { %v2969_v52 = vpack.c.bf16 %v2421_v50, %v2423_v21 }
 0x5ff   :  { %2221 = vmatpush3.bf16.msra.mxu0 %v2957_v9 }
 0x600   :  { %2222 = vmatprep.subr.bf16.mxu0 %v2961_v45 }
 0x603   :  { %2223 = vmatpush3.bf16.msra.mxu0 %v2961_v45 }
 0x604   :  { %2224 = vmatprep.subr.bf16.mxu0 %v2965_v48 }
 0x607   :  { %2225 = vmatpush3.bf16.msra.mxu0 %v2965_v48 }
 0x608   :  { %2226 = vmatprep.subr.bf16.mxu0 %v2969_v52 }
 0x60b   :  { %2227 = vmatpush3.bf16.msra.mxu0 %v2969_v52 }
 0x60c   :  { %2228 = vmatprep.subr.bf16.mxu0 %v2936_v11 }
 0x60f   :  { %2229 = vmatpush3.bf16.msra.mxu0 %v2936_v11 }
 0x610   :  { %2230 = vmatprep.subr.bf16.mxu0 %v2934_v51 }
 0x613   :  { %2231 = vmatpush3.bf16.msra.mxu0 %v2934_v51 }
 0x614   :  { %2056 = vmatprep.subr.bf16.mxu0 %v2312_v53 }
 0x616   :  { %2233 = vmatmul.mubr.bf16.vlgmr.msra.gmra.mxu0 %v2488_v56 }
 0x617   :  { %2236 = vmatprep.mubr.bf16.mxu0 %v2489_v10  ;;  %2057 = vmatpush3.bf16.msra.mxu0 %v2313_v54 }
 0x618   :  { %2058 = vmatprep.subr.bf16.mxu0 %v2314_v55 }
 0x61b   :  { %2059 = vmatpush3.bf16.msra.mxu0 %v2315_v57 }
 0x61c   :  { %2060 = vmatprep.subr.bf16.mxu0 %v2316_v59 }
 0x61e   :  { %2237 = vmatmul.mubr.bf16.gmra.mxu0 %v2490_v60 }
 0x61f   :  { %2240 = vmatprep.mubr.bf16.mxu0 %v2491_v22  ;;  %2061 = vmatpush3.bf16.msra.mxu0 %v2317_v16 }
 0x620   :  { %2062 = vmatprep.subr.bf16.mxu0 %v2318_v17 }
 0x623   :  { %2063 = vmatpush3.bf16.msra.mxu0 %v2319_v23 }
 0x624   :  { %2064 = vmatprep.subr.bf16.mxu0 %v2320_v27 }
 0x626   :  { %2241 = vmatmul.mubr.bf16.gmra.mxu0 %v2492_v62 }
 0x627   :  { %2244 = vmatprep.mubr.bf16.mxu0 %v2493_v63  ;;  %2065 = vmatpush3.bf16.msra.mxu0 %v2321_v42 }
 0x628   :  { %2066 = vmatprep.subr.bf16.mxu0 %v2322_v61 }
 0x62b   :  { %2067 = vmatpush3.bf16.msra.mxu0 %v2323_v1 }
 0x62c   :  { %2068 = vmatprep.subr.bf16.mxu0 %v2324_v2 }
 0x62e   :  { %2245 = vmatmul.mubr.bf16.gmra.mxu0 %v2494_v0 }
 0x62f   :  { %1519 = vmatprep.mubr.bf16.mxu0 %v2934_v51  ;;  %2069 = vmatpush3.bf16.msra.mxu0 %v2325_v3 }
 0x630   :  { %2070 = vmatprep.subr.bf16.mxu0 %v2326_v31 }
 0x633   :  { %2071 = vmatpush3.bf16.msra.mxu0 %v2327_v5 }
 0x6d6   :  { %v2234_v51 = vpop.f32.mrf.mxu0 }
 0x6d8   :  { %v1314_v6 = vpop.f32.mrf.mxu0 }
 0x6da   :  { %v2235_v7 = vpop.f32.mrf.mxu0 }
 0x6db   :  { %v1378_v24 = vpack.c.bf16 %v2235_v7, %v2234_v51 }
 0x6dc   :  { %v1317_v8 = vpop.f32.mrf.mxu0 }
 0x6dd   :  { %v1377_v12 = vpack.c.bf16 %v1317_v8, %v1314_v6 }
 0x6de   :  { %v2238_v18 = vpop.f32.mrf.mxu0 }
 0x6df   :  { %1520 = vmatmul.mubr.bf16.vlgmr.msra.gmra.mxu0 %v1377_v12 }
 0x6e0   :  { %1527 = vmatprep.mubr.bf16.mxu0 %v2936_v11  ;;  %v1330_v19 = vpop.f32.mrf.mxu0 }
 0x6e2   :  { %v2239_v49 = vpop.f32.mrf.mxu0 }
 0x6e3   :  { %v1380_v58 = vpack.c.bf16 %v2239_v49, %v2238_v18 }
 0x6e4   :  { %v1333_v13 = vpop.f32.mrf.mxu0 }
 0x6e5   :  { %v1379_v15 = vpack.c.bf16 %v1333_v13, %v1330_v19 }
 0x6e6   :  { %v2242_v14 = vpop.f32.mrf.mxu0 }
 0x6e7   :  { %1528 = vmatmul.mubr.bf16.gmra.mxu0 %v1378_v24 }
 0x6e8   :  { %1535 = vmatprep.mubr.bf16.mxu0 %v2969_v52  ;;  %v1346_v25 = vpop.f32.mrf.mxu0 }
 0x6ea   :  { %v2243_v26 = vpop.f32.mrf.mxu0 }
 0x6eb   :  { %v1382_v30 = vpack.c.bf16 %v2243_v26, %v2242_v14 }
 0x6ec   :  { %v1349_v20 = vpop.f32.mrf.mxu0 }
 0x6ed   :  { %v1381_v11 = vpack.c.bf16 %v1349_v20, %v1346_v25 }
 0x6ee   :  { %v2246_v28 = vpop.f32.mrf.mxu0 }
 0x6ef   :  { %1536 = vmatmul.mubr.bf16.gmra.mxu0 %v1379_v15 }
 0x6f0   :  { %1543 = vmatprep.mubr.bf16.mxu0 %v2965_v48  ;;  %v1362_v29 = vpop.f32.mrf.mxu0 }
 0x6f2   :  { %v2247_v32 = vpop.f32.mrf.mxu0 }
 0x6f3   :  { %v1384_v39 = vpack.c.bf16 %v2247_v32, %v2246_v28 }
 0x6f4   :  { %v1365_v33 = vpop.f32.mrf.mxu0 }
 0x6f5   :  { %v1383_v35 = vpack.c.bf16 %v1365_v33, %v1362_v29 }
 0x6f7   :  { %1544 = vmatmul.mubr.bf16.gmra.mxu0 %v1380_v58 }
 0x6f8   :  { %1551 = vmatprep.mubr.bf16.mxu0 %v2961_v45 }
 0x6ff   :  { %1552 = vmatmul.mubr.bf16.gmra.mxu0 %v1381_v11 }
 0x700   :  { %1559 = vmatprep.mubr.bf16.mxu0 %v2957_v9 }
 0x707   :  { %1560 = vmatmul.mubr.bf16.gmra.mxu0 %v1382_v30 }
 0x708   :  { %1567 = vmatprep.mubr.bf16.mxu0 %v2953_v36 }
 0x70f   :  { %1568 = vmatmul.mubr.bf16.gmra.mxu0 %v1383_v35 }
 0x710   :  { %1575 = vmatprep.mubr.bf16.mxu0 %v2950_v37 }
 0x717   :  { %1576 = vmatmul.mubr.bf16.gmra.mxu0 %v1384_v39 }
 0x79f   :  { %v2072_v41 = vpop.f32.mrf.mxu0 }
 0x7a1   :  { %v2073_v34 = vpop.f32.mrf.mxu0 }
 0x7a2   :  { %v2074_v38 = vadd.f32 %v2073_v34, %v2072_v41 }
 0x7a3   :  { %v2075_v43 = vpop.f32.mrf.mxu0 }
 0x7a4   :  { %v1522_v9 = vadd.f32 %v2074_v38, %v3058_v40 }
 0x7a5   :  { %v2076_v44 = vpop.f32.mrf.mxu0 }
 0x7a6   :  { %v1784_v36 = vmul.f32 -1.442695, %v1522_v9  ;;  %v2077_v4 = vadd.f32 %v2076_v44, %v2075_v43 }
 0x7a7   :  { %v2078_v45 = vpop.f32.mrf.mxu0 }
 0x7a8   :  { %2424 = vpow2.f32 %v1784_v36  ;;  %v1525_v37 = vadd.f32 %v2077_v4, %v3058_v40 }
 0x7a9   :  { %v2079_v46 = vpop.f32.mrf.mxu0 }
 0x7aa   :  { %v1785_v47 = vmul.f32 -1.442695, %v1525_v37  ;;  %v2080_v48 = vadd.f32 %v2079_v46, %v2078_v45 }
 0x7ab   :  { %v2081_v50 = vpop.f32.mrf.mxu0 }
 0x7ac   :  { %2426 = vpow2.f32 %v1785_v47  ;;  %v1530_v21 = vadd.f32 %v2080_v48, %v3058_v40 }
 0x7ad   :  { %v2082_v52 = vpop.f32.mrf.mxu0 }
 0x7ae   :  { %v1786_v53 = vmul.f32 -1.442695, %v1530_v21  ;;  %v2083_v54 = vadd.f32 %v2082_v52, %v2081_v50 }
 0x7af   :  { %v2084_v55 = vpop.f32.mrf.mxu0 }
 0x7b0   :  { %2428 = vpow2.f32 %v1786_v53  ;;  %v1533_v56 = vadd.f32 %v2083_v54, %v3058_v40 }
 0x7b1   :  { %v2085_v10 = vpop.f32.mrf.mxu0 }
 0x7b2   :  { %v1787_v57 = vmul.f32 -1.442695, %v1533_v56  ;;  %v2086_v59 = vadd.f32 %v2085_v10, %v2084_v55 }
 0x7b3   :  { %v2087_v16 = vpop.f32.mrf.mxu0 }
 0x7b4   :  { %2430 = vpow2.f32 %v1787_v57  ;;  %v1538_v17 = vadd.f32 %v2086_v59, %v3058_v40 }
 0x7b5   :  { %v2425_v60 = vpop.eup %2424  ;;  %v2088_v22 = vpop.f32.mrf.mxu0 }
 0x7b6   :  { %v1632_v23 = vadd.f32 1.0, %v2425_v60  ;;  %v1788_v27 = vmul.f32 -1.442695, %v1538_v17  ;;  %v2089_v42 = vadd.f32 %v2088_v22, %v2087_v16 }
 0x7b7   :  { %v2090_v61 = vpop.f32.mrf.mxu0 }
 0x7b8   :  { %2432 = vrcp.f32 %v1632_v23  ;;  %v1541_v62 = vadd.f32 %v2089_v42, %v3058_v40 }
 0x7b9   :  { %v2427_v63 = vpop.eup %2426  ;;  %2434 = vpow2.f32 %v1788_v27  ;;  %v2091_v1 = vpop.f32.mrf.mxu0 }
 0x7ba   :  { %v1633_v0 = vadd.f32 1.0, %v2427_v63  ;;  %v1789_v2 = vmul.f32 -1.442695, %v1541_v62  ;;  %v2092_v3 = vadd.f32 %v2091_v1, %v2090_v61 }
 0x7bb   :  { %v2093_v31 = vpop.f32.mrf.mxu0 }
 0x7bc   :  { %2436 = vrcp.f32 %v1633_v0  ;;  %v1546_v5 = vadd.f32 %v2092_v3, %v3058_v40 }
 0x7bd   :  { %v2429_v51 = vpop.eup %2428  ;;  %2438 = vpow2.f32 %v1789_v2  ;;  %v2094_v6 = vpop.f32.mrf.mxu0 }
 0x7be   :  { %v1634_v7 = vadd.f32 1.0, %v2429_v51  ;;  %v1790_v8 = vmul.f32 -1.442695, %v1546_v5  ;;  %v2095_v12 = vadd.f32 %v2094_v6, %v2093_v31 }
 0x7bf   :  { %v2096_v18 = vpop.f32.mrf.mxu0 }
 0x7c0   :  { %2440 = vrcp.f32 %v1634_v7  ;;  %v1549_v19 = vadd.f32 %v2095_v12, %v3058_v40 }
 0x7c1   :  { %v2431_v24 = vpop.eup %2430  ;;  %2442 = vpow2.f32 %v1790_v8  ;;  %v2097_v49 = vpop.f32.mrf.mxu0 }
 0x7c2   :  { %v1635_v13 = vadd.f32 1.0, %v2431_v24  ;;  %v1791_v15 = vmul.f32 -1.442695, %v1549_v19  ;;  %v2098_v14 = vadd.f32 %v2097_v49, %v2096_v18 }
 0x7c3   :  { %v2099_v25 = vpop.f32.mrf.mxu0 }
 0x7c4   :  { %2444 = vrcp.f32 %v1635_v13  ;;  %v1554_v58 = vadd.f32 %v2098_v14, %v3058_v40 }
 0x7c5   :  { %v2433_v26 = vpop.eup %2432  ;;  %2446 = vpow2.f32 %v1791_v15  ;;  %v2100_v20 = vpop.f32.mrf.mxu0 }
 0x7c6   :  { %v2435_v11 = vpop.eup %2434  ;;  %1680 = vst [vmem:[%s3134_s10] sm:$0xff] %v2433_v26  ;;  %v1792_v28 = vmul.f32 -1.442695, %v1554_v58  ;;  %v2101_v29 = vadd.f32 %v2100_v20, %v2099_v25 }
 0x7c7   :  { %v1636_v30 = vadd.f32 1.0, %v2435_v11  ;;  %v2102_v32 = vpop.f32.mrf.mxu0 }
 0x7c8   :  { %2448 = vpow2.f32 %v1792_v28  ;;  %v1557_v33 = vadd.f32 %v2101_v29, %v3058_v40 }
 0x7c9   :  { %v2437_v35 = vpop.eup %2436  ;;  %2450 = vrcp.f32 %v1636_v30  ;;  %v2103_v39 = vpop.f32.mrf.mxu0 }
 0x7ca   :  { %v2439_v41 = vpop.eup %2438  ;;  %1681 = vst [vmem:[%s3134_s10 + $0x8] sm:$0xff] %v2437_v35  ;;  %v1793_v34 = vmul.f32 -1.442695, %v1557_v33  ;;  %v2104_v38 = vadd.f32 %v2103_v39, %v2102_v32 }
 0x7cb   :  { %v1637_v43 = vadd.f32 1.0, %v2439_v41  ;;  %v2105_v9 = vpop.f32.mrf.mxu0 }
 0x7cc   :  { %2452 = vpow2.f32 %v1793_v34  ;;  %v1562_v44 = vadd.f32 %v2104_v38, %v3058_v40 }
 0x7cd   :  { %v2441_v36 = vpop.eup %2440  ;;  %2454 = vrcp.f32 %v1637_v43  ;;  %v2106_v4 = vpop.f32.mrf.mxu0 }
 0x7ce   :  { %v2443_v45 = vpop.eup %2442  ;;  %1682 = vst [vmem:[%s3134_s10 + $0x10] sm:$0xff] %v2441_v36  ;;  %v1794_v37 = vmul.f32 -1.442695, %v1562_v44  ;;  %v2107_v46 = vadd.f32 %v2106_v4, %v2105_v9 }
 0x7cf   :  { %v1638_v47 = vadd.f32 1.0, %v2443_v45  ;;  %v2108_v48 = vpop.f32.mrf.mxu0 }
 0x7d0   :  { %2456 = vpow2.f32 %v1794_v37  ;;  %v1565_v50 = vadd.f32 %v2107_v46, %v3058_v40 }
 0x7d1   :  { %v2445_v21 = vpop.eup %2444  ;;  %2458 = vrcp.f32 %v1638_v47  ;;  %v2109_v52 = vpop.f32.mrf.mxu0 }
 0x7d2   :  { %v2447_v53 = vpop.eup %2446  ;;  %1683 = vst [vmem:[%s3134_s10 + $0x18] sm:$0xff] %v2445_v21  ;;  %v1795_v54 = vmul.f32 -1.442695, %v1565_v50  ;;  %v2110_v55 = vadd.f32 %v2109_v52, %v2108_v48 }
 0x7d3   :  { %v1639_v56 = vadd.f32 1.0, %v2447_v53  ;;  %v2111_v10 = vpop.f32.mrf.mxu0 }
 0x7d4   :  { %2460 = vpow2.f32 %v1795_v54  ;;  %v1570_v57 = vadd.f32 %v2110_v55, %v3058_v40 }
 0x7d5   :  { %v2449_v59 = vpop.eup %2448  ;;  %2462 = vrcp.f32 %v1639_v56  ;;  %v2112_v16 = vpop.f32.mrf.mxu0 }
 0x7d6   :  { %v2451_v17 = vpop.eup %2450  ;;  %v1640_v60 = vadd.f32 1.0, %v2449_v59  ;;  %v1796_v22 = vmul.f32 -1.442695, %v1570_v57  ;;  %v2113_v23 = vadd.f32 %v2112_v16, %v2111_v10 }
 0x7d7   :  { %1684 = vst [vmem:[%s3134_s10 + $0x20] sm:$0xff] %v2451_v17  ;;  %v2114_v27 = vpop.f32.mrf.mxu0 }
 0x7d8   :  { %2464 = vrcp.f32 %v1640_v60  ;;  %v1573_v42 = vadd.f32 %v2113_v23, %v3058_v40 }
 0x7d9   :  { %v2453_v61 = vpop.eup %2452  ;;  %2466 = vpow2.f32 %v1796_v22  ;;  %v2115_v62 = vpop.f32.mrf.mxu0 }
 0x7da   :  { %v2455_v63 = vpop.eup %2454  ;;  %v1641_v1 = vadd.f32 1.0, %v2453_v61  ;;  %v1797_v0 = vmul.f32 -1.442695, %v1573_v42  ;;  %v2116_v2 = vadd.f32 %v2115_v62, %v2114_v27 }
 0x7db   :  { %1685 = vst [vmem:[%s3134_s10 + $0x28] sm:$0xff] %v2455_v63  ;;  %v2117_v3 = vpop.f32.mrf.mxu0 }
 0x7dc   :  { %2468 = vrcp.f32 %v1641_v1  ;;  %v1578_v31 = vadd.f32 %v2116_v2, %v3058_v40 }
 0x7dd   :  { %v2457_v5 = vpop.eup %2456  ;;  %2470 = vpow2.f32 %v1797_v0  ;;  %v2118_v51 = vpop.f32.mrf.mxu0 }
 0x7de   :  { %v2459_v6 = vpop.eup %2458  ;;  %v1642_v7 = vadd.f32 1.0, %v2457_v5  ;;  %v1798_v8 = vmul.f32 -1.442695, %v1578_v31  ;;  %v2119_v12 = vadd.f32 %v2118_v51, %v2117_v3 }
 0x7df   :  { %1686 = vst [vmem:[%s3134_s10 + $0x30] sm:$0xff] %v2459_v6 }
 0x7e0   :  { %2472 = vrcp.f32 %v1642_v7  ;;  %v1581_v18 = vadd.f32 %v2119_v12, %v3058_v40 }
 0x7e1   :  { %v2461_v19 = vpop.eup %2460  ;;  %2474 = vpow2.f32 %v1798_v8 }
 0x7e2   :  { %v2463_v24 = vpop.eup %2462  ;;  %v1643_v49 = vadd.f32 1.0, %v2461_v19  ;;  %v1799_v13 = vmul.f32 -1.442695, %v1581_v18 }
 0x7e3   :  { %1687 = vst [vmem:[%s3134_s10 + $0x38] sm:$0xff] %v2463_v24 }
 0x7e4   :  { %2476 = vrcp.f32 %v1643_v49 }
 0x7e5   :  { %v2465_v15 = vpop.eup %2464  ;;  %2478 = vpow2.f32 %v1799_v13 }
 0x7e6   :  { %v2467_v14 = vpop.eup %2466  ;;  %1688 = vst [vmem:[%s3134_s10 + $0x40] sm:$0xff] %v2465_v15 }
 0x7e7   :  { %v1644_v25 = vadd.f32 1.0, %v2467_v14 }
 0x7e9   :  { %v2469_v58 = vpop.eup %2468  ;;  %2480 = vrcp.f32 %v1644_v25 }
 0x7ea   :  { %v2471_v40 = vpop.eup %2470  ;;  %1689 = vst [vmem:[%s3134_s10 + $0x48] sm:$0xff] %v2469_v58 }
 0x7eb   :  { %v1645_v26 = vadd.f32 1.0, %v2471_v40 }
 0x7ed   :  { %v2473_v20 = vpop.eup %2472  ;;  %2482 = vrcp.f32 %v1645_v26 }
 0x7ee   :  { %v2475_v11 = vpop.eup %2474  ;;  %1690 = vst [vmem:[%s3134_s10 + $0x50] sm:$0xff] %v2473_v20 }
 0x7ef   :  { %v1646_v28 = vadd.f32 1.0, %v2475_v11 }
 0x7f1   :  { %v2477_v29 = vpop.eup %2476  ;;  %2484 = vrcp.f32 %v1646_v28 }
 0x7f2   :  { %v2479_v30 = vpop.eup %2478  ;;  %1691 = vst [vmem:[%s3134_s10 + $0x58] sm:$0xff] %v2477_v29 }
 0x7f3   :  { %v1647_v32 = vadd.f32 1.0, %v2479_v30 }
 0x7f5   :  { %2486 = vrcp.f32 %v1647_v32 }
 0x7f6   :  { %v2481_v33 = vpop.eup %2480 }
 0x7f7   :  { %1692 = vst [vmem:[%s3134_s10 + $0x60] sm:$0xff] %v2481_v33 }
 0x7fa   :  { %v2483_v35 = vpop.eup %2482 }
 0x7fb   :  { %1693 = vst [vmem:[%s3134_s10 + $0x68] sm:$0xff] %v2483_v35 }
 0x7fe   :  { %v2485_v39 = vpop.eup %2484 }
 0x7ff   :  { %1694 = vst [vmem:[%s3134_s10 + $0x70] sm:$0xff] %v2485_v39 }
 0x802   :  { %v2487_v41 = vpop.eup %2486 }
 0x803   :  { %1695 = vst [vmem:[%s3134_s10 + $0x78] sm:$0xff] %v2487_v41 }

</bundles_post_ra>
